<compile_context>
chip_gen: v7x
topology: tpu7x:2x2x1
jax: 0.10.0
libtpu: 0.0.40
codegen_flags: <defaults>
</compile_context>

<pallas_src>
import functools
import math

import jax
import jax.numpy as jnp
import numpy as np
from jax.experimental import pallas as pl
from jax.experimental.pallas import tpu as pltpu

_VMEM_LIMIT = 32 * 1024 * 1024


def _round_up(x, m):
    return ((x + m - 1) // m) * m


def _choose_tile(batch, max_tile, align):
    """Pick a batch tile (multiple of `align`), preferring >=2 grid steps."""
    if batch <= align:
        return batch                       # single block == full (padded) batch
    if batch >= 2 * max_tile:
        return max_tile
    half = -(-batch // 2)                  # ceil(batch / 2)
    return min(max_tile, _round_up(half, align))


# ----------------------------------------------------------------------------
# Pallas kernels
# ----------------------------------------------------------------------------
def _conv_relu_pool_kernel(planes_ref, w_ref, b_ref, o_ref, rhs_ref, *, wd):
    """Fused 5x5 valid-conv + bias + ReLU + 2x2/stride-2 max-pool.

    planes_ref: (4*C, tb*HW)  2x2 de-interleaved input parity planes; row
                              (pr*2+pc)*C + c, column b*HW + hd*wd + wdx.
    w_ref:      (4, OC, 36*C) per pool-corner weights; row group
                              g*(4*C) + (pr*2+pc)*C + c with g = br*3 + bc.
    b_ref:      (OC, 1)
    o_ref:      (OC, tb*HW)   pooled activation on the same padded grid.
    rhs_ref:    (36*C, tb*HW) VMEM scratch: 9 lane-shifted plane groups.
    """
    n = planes_ref.shape[-1]
    rows = planes_ref.shape[0]            # 4*C
    block = planes_ref[...]

    # Build the shared GEMM operand: 9 lane-shifted copies of the plane block.
    # Shift s = br*wd + bc maps output position (ph, pw) to input position
    # (ph+br, pw+bc) on the de-interleaved grid; valid outputs never wrap.
    for br in range(3):
        for bc in range(3):
            s = br * wd + bc
            g = br * 3 + bc
            shifted = block if s == 0 else pltpu.roll(block, n - s, 1)
            rhs_ref[g * rows:(g + 1) * rows, :] = shifted
    rhs = rhs_ref[...]

    # One GEMM per pooling-window corner; max over corners == 2x2 max-pool
    # (bias add and ReLU are monotone, so they commute with the max).
    z = None
    for corner in range(4):
        zc = jnp.dot(w_ref[corner], rhs, preferred_element_type=jnp.float32)
        z = zc if z is None else jnp.maximum(z, zc)
    o_ref[...] = jnp.maximum(z + b_ref[...], 0.0).astype(o_ref.dtype)


def _fc_stack_kernel(act_ref, w1_ref, b1_ref, w2_ref, b2_ref, w3_ref, b3_ref,
                     o_ref):
    """Fused fc1+ReLU -> fc2+ReLU -> fc3 (single K=400 GEMM for fc1)."""
    h = jnp.dot(act_ref[...], w1_ref[...], preferred_element_type=jnp.float32)
    h = jnp.maximum(h + b1_ref[...], 0.0)
    h = jnp.dot(h, w2_ref[...], preferred_element_type=jnp.float32)
    h = jnp.maximum(h + b2_ref[...], 0.0)
    out = jnp.dot(h, w3_ref[...], preferred_element_type=jnp.float32) + b3_ref[...]
    o_ref[...] = out.astype(o_ref.dtype)


# ----------------------------------------------------------------------------
# XLA glue (tiny, no data blow-up)
# ----------------------------------------------------------------------------
def _deinterleave(x_cbhw, hd_pad, wd_pad):
    """(C, B, H, W) -> (4, C, B, hd_pad, wd_pad) 2x2-parity planes."""
    parts = []
    for pr in range(2):
        for pc in range(2):
            parts.append(x_cbhw[:, :, pr::2, pc::2])
    d = jnp.stack(parts, axis=0)                        # (4, C, B, H//2, W//2)
    pad_h = hd_pad - d.shape[3]
    pad_w = wd_pad - d.shape[4]
    if pad_h or pad_w:
        d = jnp.pad(d, ((0, 0), (0, 0), (0, 0), (0, pad_h), (0, pad_w)))
    return d


# ----------------------------------------------------------------------------
# Pallas wrappers (batch-tiled grids)
# ----------------------------------------------------------------------------
def _conv_stage(planes, w_corners, b_col, *, hd, wd, max_tile):
    """planes: (4, C, B, hd, wd) -> pooled activation (OC, B, hd, wd)."""
    _, c_in, batch = planes.shape[:3]
    oc = w_corners.shape[1]
    hw = hd * wd
    align = 128 // math.gcd(hw, 128)
    tb = _choose_tile(batch, max_tile, align)
    bp = _round_up(batch, tb)
    if bp != batch:
        planes = jnp.pad(planes, ((0, 0), (0, 0), (0, bp - batch), (0, 0), (0, 0)))
    planes2d = planes.reshape(4 * c_in, bp * hw)        # rows (pr*2+pc)*C + c

    out = pl.pallas_call(
        functools.partial(_conv_relu_pool_kernel, wd=wd),
        out_shape=jax.ShapeDtypeStruct((oc, bp * hw), jnp.float32),
        grid=(bp // tb,),
        in_specs=[
            pl.BlockSpec((4 * c_in, tb * hw), lambda i: (0, i)),
            pl.BlockSpec(w_corners.shape, lambda i: (0, 0, 0)),
            pl.BlockSpec(b_col.shape, lambda i: (0, 0)),
        ],
        out_specs=pl.BlockSpec((oc, tb * hw), lambda i: (0, i)),
        scratch_shapes=[pltpu.VMEM((36 * c_in, tb * hw), jnp.float32)],
        compiler_params=pltpu.CompilerParams(
            dimension_semantics=("parallel",),
            vmem_limit_bytes=_VMEM_LIMIT),
    )(planes2d, w_corners, b_col)

    out = out.reshape(oc, bp, hd, wd)
    return out[:, :batch] if bp != batch else out


def _fc_stack(act, w1, b1, w2, b2, w3, b3, *, max_tile):
    """act: (B, 400) -> padded logits (B, ncp)."""
    batch, k = act.shape
    ncp = w3.shape[1]
    tb = _choose_tile(batch, max_tile, 8)
    bp = _round_up(batch, tb)
    if bp != batch:
        act = jnp.pad(act, ((0, bp - batch), (0, 0)))

    out = pl.pallas_call(
        _fc_stack_kernel,
        out_shape=jax.ShapeDtypeStruct((bp, ncp), jnp.float32),
        grid=(bp // tb,),
        in_specs=[
            pl.BlockSpec((tb, k), lambda i: (i, 0)),
            pl.BlockSpec(w1.shape, lambda i: (0, 0)),
            pl.BlockSpec(b1.shape, lambda i: (0, 0)),
            pl.BlockSpec(w2.shape, lambda i: (0, 0)),
            pl.BlockSpec(b2.shape, lambda i: (0, 0)),
            pl.BlockSpec(w3.shape, lambda i: (0, 0)),
            pl.BlockSpec(b3.shape, lambda i: (0, 0)),
        ],
        out_specs=pl.BlockSpec((tb, ncp), lambda i: (i, 0)),
        compiler_params=pltpu.CompilerParams(
            dimension_semantics=("parallel",),
            vmem_limit_bytes=_VMEM_LIMIT),
    )(act, w1, b1, w2, b2, w3, b3)

    return out[:batch] if bp != batch else out


# ----------------------------------------------------------------------------
# Parameters: torch-layout Xavier init + one-time kernel-friendly re-layout
# ----------------------------------------------------------------------------
def init_params(key, num_classes=33, input_channels=1):
    ks = jax.random.split(key, 5)

    def xavier_conv(k, oc, ic, ksz):
        n_in = ic * ksz * ksz
        n_out = oc * ksz * ksz
        limit = math.sqrt(6.0 / (n_in + n_out))
        return jax.random.uniform(k, (oc, ic, ksz, ksz), jnp.float32, -limit, limit)

    def xavier_fc(k, out_f, in_f):
        limit = math.sqrt(6.0 / (in_f + out_f))
        return jax.random.uniform(k, (out_f, in_f), jnp.float32, -limit, limit)

    return {
        "conv1_w": xavier_conv(ks[0], 6, input_channels, 5),
        "conv1_b": jnp.zeros((6,), jnp.float32),
        "conv2_w": xavier_conv(ks[1], 16, 6, 5),
        "conv2_b": jnp.zeros((16,), jnp.float32),
        "fc1_w": xavier_fc(ks[2], 120, 16 * 5 * 5),
        "fc1_b": jnp.zeros((120,), jnp.float32),
        "fc2_w": xavier_fc(ks[3], 84, 120),
        "fc2_b": jnp.zeros((84,), jnp.float32),
        "fc3_w": xavier_fc(ks[4], num_classes, 84),
        "fc3_b": jnp.zeros((num_classes,), jnp.float32),
    }


def _corner_weights(conv_w, oc_pad=None):
    """(OC, C, 5, 5) torch conv weight -> (4, OCp, 36*C) per-corner matrices.

    Row index of the GEMM operand: g*(4*C) + (pr*2+pc)*C + c, where the tap at
    absolute offset (a, b) = (dy+kh, dx+kw) maps to g = (a//2)*3 + (b//2) and
    parity (pr, pc) = (a%2, b%2).
    """
    conv_w = np.asarray(conv_w, dtype=np.float32)
    oc, c, k, k2 = conv_w.shape
    assert k == 5 and k2 == 5
    ocp = oc if oc_pad is None else oc_pad
    w = np.zeros((4, ocp, 9, 4, c), np.float32)
    for dy in range(2):
        for dx in range(2):
            for kh in range(k):
                for kw in range(k):
                    a, b = dy + kh, dx + kw
                    g = (a // 2) * 3 + (b // 2)
                    pp = (a % 2) * 2 + (b % 2)
                    w[dy * 2 + dx, :oc, g, pp, :] = conv_w[:, :, kh, kw]
    return jnp.asarray(w.reshape(4, ocp, 36 * c))


def prepare_params(p):
    """One-time host-side re-layout of torch-style params into kernel layouts."""
    oc1 = p["conv1_w"].shape[0]
    oc1p = _round_up(oc1, 8)                       # pad conv1 OC 6 -> 8
    oc2 = p["conv2_w"].shape[0]
    oc2p = _round_up(oc2, 8)
    nc = p["fc3_w"].shape[0]
    ncp = _round_up(nc, 128)                       # lane-dense fc3 output

    conv1_b = np.zeros((oc1p, 1), np.float32)
    conv1_b[:oc1, 0] = np.asarray(p["conv1_b"], np.float32)
    conv2_b = np.zeros((oc2p, 1), np.float32)
    conv2_b[:oc2, 0] = np.asarray(p["conv2_b"], np.float32)

    fc3_w = np.zeros((p["fc3_w"].shape[1], ncp), np.float32)
    fc3_w[:, :nc] = np.asarray(p["fc3_w"], np.float32).T
    fc3_b = np.zeros((1, ncp), np.float32)
    fc3_b[0, :nc] = np.asarray(p["fc3_b"], np.float32)

    return {
        "conv1_wc": _corner_weights(p["conv1_w"], oc_pad=oc1p),   # (4, 8, 36*C)
        "conv1_b": jnp.asarray(conv1_b),
        "conv2_wc": _corner_weights(p["conv2_w"], oc_pad=oc2p),   # (4, 16, 216)
        "conv2_b": jnp.asarray(conv2_b),
        "fc1_w": jnp.asarray(np.asarray(p["fc1_w"], np.float32).T),   # (400, 120)
        "fc1_b": jnp.asarray(np.asarray(p["fc1_b"], np.float32)[None, :]),
        "fc2_w": jnp.asarray(np.asarray(p["fc2_w"], np.float32).T),   # (120, 84)
        "fc2_b": jnp.asarray(np.asarray(p["fc2_b"], np.float32)[None, :]),
        "fc3_w": jnp.asarray(fc3_w),                                   # (84, ncp)
        "fc3_b": jnp.asarray(fc3_b),
    }


# ----------------------------------------------------------------------------
# Forward pass (LeNet-5)
# ----------------------------------------------------------------------------
def lenet5_forward(prepared, x, *, num_classes):
    # x: (B, C, 32, 32) NCHW float32 (same contract as the PyTorch module)
    if x.ndim != 4:
        raise ValueError(f"Expected 4D input tensor, got {x.ndim}D")
    c_in = prepared["conv1_wc"].shape[2] // 36
    if x.shape[1] != c_in:
        raise ValueError(f"Expected {c_in} input channels, got {x.shape[1]}")
    if x.shape[2] != 32 or x.shape[3] != 32:
        raise ValueError(f"Expected 32x32 input size, got {x.shape[2]}x{x.shape[3]}")
    x = x.astype(jnp.float32)
    batch = x.shape[0]
    x_cbhw = jnp.transpose(x, (1, 0, 2, 3))                      # (C, B, 32, 32)

    # conv1 + ReLU + pool1: de-interleaved grid is 16x16 (no padding needed).
    p1 = _deinterleave(x_cbhw, 16, 16)                           # (4, C, B, 16, 16)
    a1 = _conv_stage(p1, prepared["conv1_wc"], prepared["conv1_b"],
                     hd=16, wd=16, max_tile=max(16, 128 // c_in))  # (8, B, 16, 16)
    a1 = a1[:6, :, :14, :14]                                     # valid region

    # conv2 + ReLU + pool2: de-interleaved 7x7 grid padded to 8x8 lanes.
    p2 = _deinterleave(a1, 8, 8)                                 # (4, 6, B, 8, 8)
    a2 = _conv_stage(p2, prepared["conv2_wc"], prepared["conv2_b"],
                     hd=8, wd=8, max_tile=64)                    # (16, B, 8, 8)
    a2 = a2[:, :, :5, :5]                                        # (16, B, 5, 5)

    # Flatten in torch order (c*25 + i*5 + j) and run the fused FC stack.
    act = jnp.transpose(a2, (1, 0, 2, 3)).reshape(batch, -1)     # (B, 400)
    logits = _fc_stack(act,
                       prepared["fc1_w"], prepared["fc1_b"],
                       prepared["fc2_w"], prepared["fc2_b"],
                       prepared["fc3_w"], prepared["fc3_b"],
                       max_tile=1024)                            # (B, ncp)
    return logits[:, :num_classes]


# ----------------------------------------------------------------------------
# Plain-JAX reference (numerical verification only)
# ----------------------------------------------------------------------------
def _reference_forward(params, x):
    hi = jax.lax.Precision.HIGHEST

    def conv(y, w, b):
        z = jax.lax.conv_general_dilated(
            y, w, window_strides=(1, 1), padding="VALID",
            dimension_numbers=("NCHW", "OIHW", "NCHW"), precision=hi)
        return jax.nn.relu(z + b.reshape(1, -1, 1, 1))

    def pool(y):
        bb, cc, hh, ww = y.shape
        return y.reshape(bb, cc, hh // 2, 2, ww // 2, 2).max(axis=(3, 5))

    y = pool(conv(x, params["conv1_w"], params["conv1_b"]))
    y = pool(conv(y, params["conv2_w"], params["conv2_b"]))
    y = y.reshape(y.shape[0], -1)
    y = jax.nn.relu(jnp.dot(y, params["fc1_w"].T, precision=hi) + params["fc1_b"])
    y = jax.nn.relu(jnp.dot(y, params["fc2_w"].T, precision=hi) + params["fc2_b"])
    return jnp.dot(y, params["fc3_w"].T, precision=hi) + params["fc3_b"]


if __name__ == "__main__":
    key = jax.random.PRNGKey(0)
    k_params, k_x = jax.random.split(key)
    params = init_params(k_params, num_classes=33, input_channels=1)
    prepared = prepare_params(params)

    # Module requires 32x32 single-channel input; small batch.
    x = jax.random.normal(k_x, (4, 1, 32, 32), jnp.float32)

    fwd = jax.jit(functools.partial(lenet5_forward, num_classes=33))
    logits = fwd(prepared, x)
    jax.block_until_ready(logits)
    assert logits.shape == (4, 33), logits.shape

    ref = _reference_forward(params, x)
    err = float(jnp.max(jnp.abs(logits - ref)))
    assert err < 1e-3, f"mismatch vs reference: max abs err = {err}"

    print("KERNEL_OK")
</pallas_src>

<mosaic_0001>
module attributes {stable_mosaic.version = 11 : i64} {
  func.func @_conv_relu_pool_kernel(%arg0: i32, %arg1: memref<4x512xf32, #tpu.memory_space<vmem>>, %arg2: memref<4x8x36xf32, #tpu.memory_space<vmem>>, %arg3: memref<8x1xf32, #tpu.memory_space<vmem>>, %arg4: memref<8x512xf32, #tpu.memory_space<vmem>>, %arg5: memref<36x512xf32, #tpu.memory_space<vmem>>) attributes {dimension_semantics = [#tpu.dimension_semantics<parallel>], iteration_bounds = array<i64: 2>, scalar_prefetch = 0 : i64, scratch_operands = 1 : i64, tpu.core_type = #tpu.core_type<tc>, window_params = [{transform_indices = @transform_0, window_bounds = array<i64: 4, 512>}, {pipeline_mode = #tpu.pipeline_mode<synchronous>, transform_indices = @transform_1, window_bounds = array<i64: 4, 8, 36>}, {pipeline_mode = #tpu.pipeline_mode<synchronous>, transform_indices = @transform_2, window_bounds = array<i64: 8, 1>}, {transform_indices = @transform_3, window_bounds = array<i64: 8, 512>}]} {
    %c0 = arith.constant 0 : index
    %c0_0 = arith.constant 0 : index
    %0 = vector.load %arg1[%c0, %c0_0] : memref<4x512xf32, #tpu.memory_space<vmem>>, vector<4x512xf32>
    %c0_1 = arith.constant 0 : index
    %c0_2 = arith.constant 0 : index
    %1 = vector.load %arg5[%c0_1, %c0_2] : memref<36x512xf32, #tpu.memory_space<vmem>>, vector<4x512xf32>
    tpu.vector_store %arg5[%c0_1, %c0_2], %0 {strides = array<i32>} : memref<36x512xf32, #tpu.memory_space<vmem>>, vector<4x512xf32>,
    %c511_i32 = arith.constant 511 : i32
    %2 = tpu.dynamic_rotate %0 by %c511_i32 dim 1 : vector<4x512xf32>, i32 -> vector<4x512xf32>
    %c4 = arith.constant 4 : index
    %c0_3 = arith.constant 0 : index
    %3 = vector.load %arg5[%c4, %c0_3] : memref<36x512xf32, #tpu.memory_space<vmem>>, vector<4x512xf32>
    tpu.vector_store %arg5[%c4, %c0_3], %2 {strides = array<i32>} : memref<36x512xf32, #tpu.memory_space<vmem>>, vector<4x512xf32>,
    %c510_i32 = arith.constant 510 : i32
    %4 = tpu.dynamic_rotate %0 by %c510_i32 dim 1 : vector<4x512xf32>, i32 -> vector<4x512xf32>
    %c8 = arith.constant 8 : index
    %c0_4 = arith.constant 0 : index
    %5 = vector.load %arg5[%c8, %c0_4] : memref<36x512xf32, #tpu.memory_space<vmem>>, vector<4x512xf32>
    tpu.vector_store %arg5[%c8, %c0_4], %4 {strides = array<i32>} : memref<36x512xf32, #tpu.memory_space<vmem>>, vector<4x512xf32>,
    %c496_i32 = arith.constant 496 : i32
    %6 = tpu.dynamic_rotate %0 by %c496_i32 dim 1 : vector<4x512xf32>, i32 -> vector<4x512xf32>
    %c12 = arith.constant 12 : index
    %c0_5 = arith.constant 0 : index
    %7 = vector.load %arg5[%c12, %c0_5] : memref<36x512xf32, #tpu.memory_space<vmem>>, vector<4x512xf32>
    tpu.vector_store %arg5[%c12, %c0_5], %6 {strides = array<i32>} : memref<36x512xf32, #tpu.memory_space<vmem>>, vector<4x512xf32>,
    %c495_i32 = arith.constant 495 : i32
    %8 = tpu.dynamic_rotate %0 by %c495_i32 dim 1 : vector<4x512xf32>, i32 -> vector<4x512xf32>
    %c16 = arith.constant 16 : index
    %c0_6 = arith.constant 0 : index
    %9 = vector.load %arg5[%c16, %c0_6] : memref<36x512xf32, #tpu.memory_space<vmem>>, vector<4x512xf32>
    tpu.vector_store %arg5[%c16, %c0_6], %8 {strides = array<i32>} : memref<36x512xf32, #tpu.memory_space<vmem>>, vector<4x512xf32>,
    %c494_i32 = arith.constant 494 : i32
    %10 = tpu.dynamic_rotate %0 by %c494_i32 dim 1 : vector<4x512xf32>, i32 -> vector<4x512xf32>
    %c20 = arith.constant 20 : index
    %c0_7 = arith.constant 0 : index
    %11 = vector.load %arg5[%c20, %c0_7] : memref<36x512xf32, #tpu.memory_space<vmem>>, vector<4x512xf32>
    tpu.vector_store %arg5[%c20, %c0_7], %10 {strides = array<i32>} : memref<36x512xf32, #tpu.memory_space<vmem>>, vector<4x512xf32>,
    %c480_i32 = arith.constant 480 : i32
    %12 = tpu.dynamic_rotate %0 by %c480_i32 dim 1 : vector<4x512xf32>, i32 -> vector<4x512xf32>
    %c24 = arith.constant 24 : index
    %c0_8 = arith.constant 0 : index
    %13 = vector.load %arg5[%c24, %c0_8] : memref<36x512xf32, #tpu.memory_space<vmem>>, vector<4x512xf32>
    tpu.vector_store %arg5[%c24, %c0_8], %12 {strides = array<i32>} : memref<36x512xf32, #tpu.memory_space<vmem>>, vector<4x512xf32>,
    %c479_i32 = arith.constant 479 : i32
    %14 = tpu.dynamic_rotate %0 by %c479_i32 dim 1 : vector<4x512xf32>, i32 -> vector<4x512xf32>
    %c28 = arith.constant 28 : index
    %c0_9 = arith.constant 0 : index
    %15 = vector.load %arg5[%c28, %c0_9] : memref<36x512xf32, #tpu.memory_space<vmem>>, vector<4x512xf32>
    tpu.vector_store %arg5[%c28, %c0_9], %14 {strides = array<i32>} : memref<36x512xf32, #tpu.memory_space<vmem>>, vector<4x512xf32>,
    %c478_i32 = arith.constant 478 : i32
    %16 = tpu.dynamic_rotate %0 by %c478_i32 dim 1 : vector<4x512xf32>, i32 -> vector<4x512xf32>
    %c32 = arith.constant 32 : index
    %c0_10 = arith.constant 0 : index
    %17 = vector.load %arg5[%c32, %c0_10] : memref<36x512xf32, #tpu.memory_space<vmem>>, vector<4x512xf32>
    tpu.vector_store %arg5[%c32, %c0_10], %16 {strides = array<i32>} : memref<36x512xf32, #tpu.memory_space<vmem>>, vector<4x512xf32>,
    %c0_11 = arith.constant 0 : index
    %c0_12 = arith.constant 0 : index
    %18 = vector.load %arg5[%c0_11, %c0_12] : memref<36x512xf32, #tpu.memory_space<vmem>>, vector<36x512xf32>
    %c0_13 = arith.constant 0 : index
    %c0_14 = arith.constant 0 : index
    %c0_15 = arith.constant 0 : index
    %19 = vector.load %arg2[%c0_13, %c0_14, %c0_15] : memref<4x8x36xf32, #tpu.memory_space<vmem>>, vector<1x8x36xf32>
    %20 = vector.shape_cast %19 : vector<1x8x36xf32> to vector<8x36xf32>
    %cst = arith.constant dense<0.000000e+00> : vector<8x512xf32>
    %21 = tpu.matmul %20, %18, %cst {dimension_numbers = #tpu.dot_dimension_numbers<[1], [0], [0], [1], [0, 0, 1, 1], [], []>} : vector<8x36xf32>, vector<36x512xf32>, vector<8x512xf32> -> vector<8x512xf32>
    %c1 = arith.constant 1 : index
    %c0_16 = arith.constant 0 : index
    %c0_17 = arith.constant 0 : index
    %22 = vector.load %arg2[%c1, %c0_16, %c0_17] : memref<4x8x36xf32, #tpu.memory_space<vmem>>, vector<1x8x36xf32>
    %23 = vector.shape_cast %22 : vector<1x8x36xf32> to vector<8x36xf32>
    %cst_18 = arith.constant dense<0.000000e+00> : vector<8x512xf32>
    %24 = tpu.matmul %23, %18, %cst_18 {dimension_numbers = #tpu.dot_dimension_numbers<[1], [0], [0], [1], [0, 0, 1, 1], [], []>} : vector<8x36xf32>, vector<36x512xf32>, vector<8x512xf32> -> vector<8x512xf32>
    %25 = arith.maximumf %21, %24 : vector<8x512xf32>
    %c2 = arith.constant 2 : index
    %c0_19 = arith.constant 0 : index
    %c0_20 = arith.constant 0 : index
    %26 = vector.load %arg2[%c2, %c0_19, %c0_20] : memref<4x8x36xf32, #tpu.memory_space<vmem>>, vector<1x8x36xf32>
    %27 = vector.shape_cast %26 : vector<1x8x36xf32> to vector<8x36xf32>
    %cst_21 = arith.constant dense<0.000000e+00> : vector<8x512xf32>
    %28 = tpu.matmul %27, %18, %cst_21 {dimension_numbers = #tpu.dot_dimension_numbers<[1], [0], [0], [1], [0, 0, 1, 1], [], []>} : vector<8x36xf32>, vector<36x512xf32>, vector<8x512xf32> -> vector<8x512xf32>
    %29 = arith.maximumf %25, %28 : vector<8x512xf32>
    %c3 = arith.constant 3 : index
    %c0_22 = arith.constant 0 : index
    %c0_23 = arith.constant 0 : index
    %30 = vector.load %arg2[%c3, %c0_22, %c0_23] : memref<4x8x36xf32, #tpu.memory_space<vmem>>, vector<1x8x36xf32>
    %31 = vector.shape_cast %30 : vector<1x8x36xf32> to vector<8x36xf32>
    %cst_24 = arith.constant dense<0.000000e+00> : vector<8x512xf32>
    %32 = tpu.matmul %31, %18, %cst_24 {dimension_numbers = #tpu.dot_dimension_numbers<[1], [0], [0], [1], [0, 0, 1, 1], [], []>} : vector<8x36xf32>, vector<36x512xf32>, vector<8x512xf32> -> vector<8x512xf32>
    %33 = arith.maximumf %29, %32 : vector<8x512xf32>
    %c0_25 = arith.constant 0 : index
    %c0_26 = arith.constant 0 : index
    %34 = vector.load %arg3[%c0_25, %c0_26] : memref<8x1xf32, #tpu.memory_space<vmem>>, vector<8x1xf32>
    %35 = vector.broadcast %34 : vector<8x1xf32> to vector<8x512xf32>
    %36 = arith.addf %33, %35 : vector<8x512xf32>
    %cst_27 = arith.constant 0.000000e+00 : f32
    %37 = vector.broadcast %cst_27 : f32 to vector<8x512xf32>
    %38 = arith.maximumf %36, %37 : vector<8x512xf32>
    %c0_28 = arith.constant 0 : index
    %c0_29 = arith.constant 0 : index
    %39 = vector.load %arg4[%c0_28, %c0_29] : memref<8x512xf32, #tpu.memory_space<vmem>>, vector<8x512xf32>
    tpu.vector_store %arg4[%c0_28, %c0_29], %38 {strides = array<i32>} : memref<8x512xf32, #tpu.memory_space<vmem>>, vector<8x512xf32>,
    return
  }
  func.func @transform_0(%arg0: i32) -> (i32, i32) {
    %c0_i32 = arith.constant 0 : i32
    %c0_i32_0 = arith.constant 0 : i32
    return %c0_i32, %arg0 : i32, i32
  }
  func.func @transform_1(%arg0: i32) -> (i32, i32, i32) {
    %c0_i32 = arith.constant 0 : i32
    %c0_i32_0 = arith.constant 0 : i32
    %c0_i32_1 = arith.constant 0 : i32
    %c0_i32_2 = arith.constant 0 : i32
    return %c0_i32, %c0_i32_0, %c0_i32_1 : i32, i32, i32
  }
  func.func @transform_2(%arg0: i32) -> (i32, i32) {
    %c0_i32 = arith.constant 0 : i32
    %c0_i32_0 = arith.constant 0 : i32
    %c0_i32_1 = arith.constant 0 : i32
    return %c0_i32, %c0_i32_0 : i32, i32
  }
  func.func @transform_3(%arg0: i32) -> (i32, i32) {
    %c0_i32 = arith.constant 0 : i32
    %c0_i32_0 = arith.constant 0 : i32
    return %c0_i32, %arg0 : i32, i32
  }
}

module attributes {stable_mosaic.version = 11 : i64} {
  func.func @_conv_relu_pool_kernel(%arg0: i32, %arg1: memref<24x128xf32, #tpu.memory_space<vmem>>, %arg2: memref<4x16x216xf32, #tpu.memory_space<vmem>>, %arg3: memref<16x1xf32, #tpu.memory_space<vmem>>, %arg4: memref<16x128xf32, #tpu.memory_space<vmem>>, %arg5: memref<216x128xf32, #tpu.memory_space<vmem>>) attributes {dimension_semantics = [#tpu.dimension_semantics<parallel>], iteration_bounds = array<i64: 2>, scalar_prefetch = 0 : i64, scratch_operands = 1 : i64, tpu.core_type = #tpu.core_type<tc>, window_params = [{transform_indices = @transform_0, window_bounds = array<i64: 24, 128>}, {pipeline_mode = #tpu.pipeline_mode<synchronous>, transform_indices = @transform_1, window_bounds = array<i64: 4, 16, 216>}, {pipeline_mode = #tpu.pipeline_mode<synchronous>, transform_indices = @transform_2, window_bounds = array<i64: 16, 1>}, {transform_indices = @transform_3, window_bounds = array<i64: 16, 128>}]} {
    %c0 = arith.constant 0 : index
    %c0_0 = arith.constant 0 : index
    %0 = vector.load %arg1[%c0, %c0_0] : memref<24x128xf32, #tpu.memory_space<vmem>>, vector<24x128xf32>
    %c0_1 = arith.constant 0 : index
    %c0_2 = arith.constant 0 : index
    %1 = vector.load %arg5[%c0_1, %c0_2] : memref<216x128xf32, #tpu.memory_space<vmem>>, vector<24x128xf32>
    tpu.vector_store %arg5[%c0_1, %c0_2], %0 {strides = array<i32>} : memref<216x128xf32, #tpu.memory_space<vmem>>, vector<24x128xf32>,
    %c127_i32 = arith.constant 127 : i32
    %2 = tpu.dynamic_rotate %0 by %c127_i32 dim 1 : vector<24x128xf32>, i32 -> vector<24x128xf32>
    %c24 = arith.constant 24 : index
    %c0_3 = arith.constant 0 : index
    %3 = vector.load %arg5[%c24, %c0_3] : memref<216x128xf32, #tpu.memory_space<vmem>>, vector<24x128xf32>
    tpu.vector_store %arg5[%c24, %c0_3], %2 {strides = array<i32>} : memref<216x128xf32, #tpu.memory_space<vmem>>, vector<24x128xf32>,
    %c126_i32 = arith.constant 126 : i32
    %4 = tpu.dynamic_rotate %0 by %c126_i32 dim 1 : vector<24x128xf32>, i32 -> vector<24x128xf32>
    %c48 = arith.constant 48 : index
    %c0_4 = arith.constant 0 : index
    %5 = vector.load %arg5[%c48, %c0_4] : memref<216x128xf32, #tpu.memory_space<vmem>>, vector<24x128xf32>
    tpu.vector_store %arg5[%c48, %c0_4], %4 {strides = array<i32>} : memref<216x128xf32, #tpu.memory_space<vmem>>, vector<24x128xf32>,
    %c120_i32 = arith.constant 120 : i32
    %6 = tpu.dynamic_rotate %0 by %c120_i32 dim 1 : vector<24x128xf32>, i32 -> vector<24x128xf32>
    %c72 = arith.constant 72 : index
    %c0_5 = arith.constant 0 : index
    %7 = vector.load %arg5[%c72, %c0_5] : memref<216x128xf32, #tpu.memory_space<vmem>>, vector<24x128xf32>
    tpu.vector_store %arg5[%c72, %c0_5], %6 {strides = array<i32>} : memref<216x128xf32, #tpu.memory_space<vmem>>, vector<24x128xf32>,
    %c119_i32 = arith.constant 119 : i32
    %8 = tpu.dynamic_rotate %0 by %c119_i32 dim 1 : vector<24x128xf32>, i32 -> vector<24x128xf32>
    %c96 = arith.constant 96 : index
    %c0_6 = arith.constant 0 : index
    %9 = vector.load %arg5[%c96, %c0_6] : memref<216x128xf32, #tpu.memory_space<vmem>>, vector<24x128xf32>
    tpu.vector_store %arg5[%c96, %c0_6], %8 {strides = array<i32>} : memref<216x128xf32, #tpu.memory_space<vmem>>, vector<24x128xf32>,
    %c118_i32 = arith.constant 118 : i32
    %10 = tpu.dynamic_rotate %0 by %c118_i32 dim 1 : vector<24x128xf32>, i32 -> vector<24x128xf32>
    %c120 = arith.constant 120 : index
    %c0_7 = arith.constant 0 : index
    %11 = vector.load %arg5[%c120, %c0_7] : memref<216x128xf32, #tpu.memory_space<vmem>>, vector<24x128xf32>
    tpu.vector_store %arg5[%c120, %c0_7], %10 {strides = array<i32>} : memref<216x128xf32, #tpu.memory_space<vmem>>, vector<24x128xf32>,
    %c112_i32 = arith.constant 112 : i32
    %12 = tpu.dynamic_rotate %0 by %c112_i32 dim 1 : vector<24x128xf32>, i32 -> vector<24x128xf32>
    %c144 = arith.constant 144 : index
    %c0_8 = arith.constant 0 : index
    %13 = vector.load %arg5[%c144, %c0_8] : memref<216x128xf32, #tpu.memory_space<vmem>>, vector<24x128xf32>
    tpu.vector_store %arg5[%c144, %c0_8], %12 {strides = array<i32>} : memref<216x128xf32, #tpu.memory_space<vmem>>, vector<24x128xf32>,
    %c111_i32 = arith.constant 111 : i32
    %14 = tpu.dynamic_rotate %0 by %c111_i32 dim 1 : vector<24x128xf32>, i32 -> vector<24x128xf32>
    %c168 = arith.constant 168 : index
    %c0_9 = arith.constant 0 : index
    %15 = vector.load %arg5[%c168, %c0_9] : memref<216x128xf32, #tpu.memory_space<vmem>>, vector<24x128xf32>
    tpu.vector_store %arg5[%c168, %c0_9], %14 {strides = array<i32>} : memref<216x128xf32, #tpu.memory_space<vmem>>, vector<24x128xf32>,
    %c110_i32 = arith.constant 110 : i32
    %16 = tpu.dynamic_rotate %0 by %c110_i32 dim 1 : vector<24x128xf32>, i32 -> vector<24x128xf32>
    %c192 = arith.constant 192 : index
    %c0_10 = arith.constant 0 : index
    %17 = vector.load %arg5[%c192, %c0_10] : memref<216x128xf32, #tpu.memory_space<vmem>>, vector<24x128xf32>
    tpu.vector_store %arg5[%c192, %c0_10], %16 {strides = array<i32>} : memref<216x128xf32, #tpu.memory_space<vmem>>, vector<24x128xf32>,
    %c0_11 = arith.constant 0 : index
    %c0_12 = arith.constant 0 : index
    %18 = vector.load %arg5[%c0_11, %c0_12] : memref<216x128xf32, #tpu.memory_space<vmem>>, vector<216x128xf32>
    %c0_13 = arith.constant 0 : index
    %c0_14 = arith.constant 0 : index
    %c0_15 = arith.constant 0 : index
    %19 = vector.load %arg2[%c0_13, %c0_14, %c0_15] : memref<4x16x216xf32, #tpu.memory_space<vmem>>, vector<1x16x216xf32>
    %20 = vector.shape_cast %19 : vector<1x16x216xf32> to vector<16x216xf32>
    %cst = arith.constant dense<0.000000e+00> : vector<16x128xf32>
    %21 = tpu.matmul %20, %18, %cst {dimension_numbers = #tpu.dot_dimension_numbers<[1], [0], [0], [1], [0, 0, 1, 1], [], []>} : vector<16x216xf32>, vector<216x128xf32>, vector<16x128xf32> -> vector<16x128xf32>
    %c1 = arith.constant 1 : index
    %c0_16 = arith.constant 0 : index
    %c0_17 = arith.constant 0 : index
    %22 = vector.load %arg2[%c1, %c0_16, %c0_17] : memref<4x16x216xf32, #tpu.memory_space<vmem>>, vector<1x16x216xf32>
    %23 = vector.shape_cast %22 : vector<1x16x216xf32> to vector<16x216xf32>
    %cst_18 = arith.constant dense<0.000000e+00> : vector<16x128xf32>
    %24 = tpu.matmul %23, %18, %cst_18 {dimension_numbers = #tpu.dot_dimension_numbers<[1], [0], [0], [1], [0, 0, 1, 1], [], []>} : vector<16x216xf32>, vector<216x128xf32>, vector<16x128xf32> -> vector<16x128xf32>
    %25 = arith.maximumf %21, %24 : vector<16x128xf32>
    %c2 = arith.constant 2 : index
    %c0_19 = arith.constant 0 : index
    %c0_20 = arith.constant 0 : index
    %26 = vector.load %arg2[%c2, %c0_19, %c0_20] : memref<4x16x216xf32, #tpu.memory_space<vmem>>, vector<1x16x216xf32>
    %27 = vector.shape_cast %26 : vector<1x16x216xf32> to vector<16x216xf32>
    %cst_21 = arith.constant dense<0.000000e+00> : vector<16x128xf32>
    %28 = tpu.matmul %27, %18, %cst_21 {dimension_numbers = #tpu.dot_dimension_numbers<[1], [0], [0], [1], [0, 0, 1, 1], [], []>} : vector<16x216xf32>, vector<216x128xf32>, vector<16x128xf32> -> vector<16x128xf32>
    %29 = arith.maximumf %25, %28 : vector<16x128xf32>
    %c3 = arith.constant 3 : index
    %c0_22 = arith.constant 0 : index
    %c0_23 = arith.constant 0 : index
    %30 = vector.load %arg2[%c3, %c0_22, %c0_23] : memref<4x16x216xf32, #tpu.memory_space<vmem>>, vector<1x16x216xf32>
    %31 = vector.shape_cast %30 : vector<1x16x216xf32> to vector<16x216xf32>
    %cst_24 = arith.constant dense<0.000000e+00> : vector<16x128xf32>
    %32 = tpu.matmul %31, %18, %cst_24 {dimension_numbers = #tpu.dot_dimension_numbers<[1], [0], [0], [1], [0, 0, 1, 1], [], []>} : vector<16x216xf32>, vector<216x128xf32>, vector<16x128xf32> -> vector<16x128xf32>
    %33 = arith.maximumf %29, %32 : vector<16x128xf32>
    %c0_25 = arith.constant 0 : index
    %c0_26 = arith.constant 0 : index
    %34 = vector.load %arg3[%c0_25, %c0_26] : memref<16x1xf32, #tpu.memory_space<vmem>>, vector<16x1xf32>
    %35 = vector.broadcast %34 : vector<16x1xf32> to vector<16x128xf32>
    %36 = arith.addf %33, %35 : vector<16x128xf32>
    %cst_27 = arith.constant 0.000000e+00 : f32
    %37 = vector.broadcast %cst_27 : f32 to vector<16x128xf32>
    %38 = arith.maximumf %36, %37 : vector<16x128xf32>
    %c0_28 = arith.constant 0 : index
    %c0_29 = arith.constant 0 : index
    %39 = vector.load %arg4[%c0_28, %c0_29] : memref<16x128xf32, #tpu.memory_space<vmem>>, vector<16x128xf32>
    tpu.vector_store %arg4[%c0_28, %c0_29], %38 {strides = array<i32>} : memref<16x128xf32, #tpu.memory_space<vmem>>, vector<16x128xf32>,
    return
  }
  func.func @transform_0(%arg0: i32) -> (i32, i32) {
    %c0_i32 = arith.constant 0 : i32
    %c0_i32_0 = arith.constant 0 : i32
    return %c0_i32, %arg0 : i32, i32
  }
  func.func @transform_1(%arg0: i32) -> (i32, i32, i32) {
    %c0_i32 = arith.constant 0 : i32
    %c0_i32_0 = arith.constant 0 : i32
    %c0_i32_1 = arith.constant 0 : i32
    %c0_i32_2 = arith.constant 0 : i32
    return %c0_i32, %c0_i32_0, %c0_i32_1 : i32, i32, i32
  }
  func.func @transform_2(%arg0: i32) -> (i32, i32) {
    %c0_i32 = arith.constant 0 : i32
    %c0_i32_0 = arith.constant 0 : i32
    %c0_i32_1 = arith.constant 0 : i32
    return %c0_i32, %c0_i32_0 : i32, i32
  }
  func.func @transform_3(%arg0: i32) -> (i32, i32) {
    %c0_i32 = arith.constant 0 : i32
    %c0_i32_0 = arith.constant 0 : i32
    return %c0_i32, %arg0 : i32, i32
  }
}

module attributes {stable_mosaic.version = 11 : i64} {
  func.func @_fc_stack_kernel(%arg0: i32, %arg1: memref<4x400xf32, #tpu.memory_space<vmem>>, %arg2: memref<400x120xf32, #tpu.memory_space<vmem>>, %arg3: memref<1x120xf32, #tpu.memory_space<vmem>>, %arg4: memref<120x84xf32, #tpu.memory_space<vmem>>, %arg5: memref<1x84xf32, #tpu.memory_space<vmem>>, %arg6: memref<84x128xf32, #tpu.memory_space<vmem>>, %arg7: memref<1x128xf32, #tpu.memory_space<vmem>>, %arg8: memref<4x128xf32, #tpu.memory_space<vmem>>) attributes {dimension_semantics = [#tpu.dimension_semantics<parallel>], iteration_bounds = array<i64: 1>, scalar_prefetch = 0 : i64, scratch_operands = 0 : i64, tpu.core_type = #tpu.core_type<tc>, window_params = [{transform_indices = @transform_0, window_bounds = array<i64: 4, 400>}, {pipeline_mode = #tpu.pipeline_mode<synchronous>, transform_indices = @transform_1, window_bounds = array<i64: 400, 120>}, {pipeline_mode = #tpu.pipeline_mode<synchronous>, transform_indices = @transform_2, window_bounds = array<i64: 1, 120>}, {pipeline_mode = #tpu.pipeline_mode<synchronous>, transform_indices = @transform_3, window_bounds = array<i64: 120, 84>}, {pipeline_mode = #tpu.pipeline_mode<synchronous>, transform_indices = @transform_4, window_bounds = array<i64: 1, 84>}, {pipeline_mode = #tpu.pipeline_mode<synchronous>, transform_indices = @transform_5, window_bounds = array<i64: 84, 128>}, {pipeline_mode = #tpu.pipeline_mode<synchronous>, transform_indices = @transform_6, window_bounds = array<i64: 1, 128>}, {transform_indices = @transform_7, window_bounds = array<i64: 4, 128>}]} {
    %c0 = arith.constant 0 : index
    %c0_0 = arith.constant 0 : index
    %0 = vector.load %arg1[%c0, %c0_0] : memref<4x400xf32, #tpu.memory_space<vmem>>, vector<4x400xf32>
    %c0_1 = arith.constant 0 : index
    %c0_2 = arith.constant 0 : index
    %1 = vector.load %arg2[%c0_1, %c0_2] : memref<400x120xf32, #tpu.memory_space<vmem>>, vector<400x120xf32>
    %cst = arith.constant dense<0.000000e+00> : vector<4x120xf32>
    %2 = tpu.matmul %0, %1, %cst {dimension_numbers = #tpu.dot_dimension_numbers<[1], [0], [0], [1], [0, 0, 1, 1], [], []>} : vector<4x400xf32>, vector<400x120xf32>, vector<4x120xf32> -> vector<4x120xf32>
    %c0_3 = arith.constant 0 : index
    %c0_4 = arith.constant 0 : index
    %3 = vector.load %arg3[%c0_3, %c0_4] : memref<1x120xf32, #tpu.memory_space<vmem>>, vector<1x120xf32>
    %4 = vector.broadcast %3 : vector<1x120xf32> to vector<4x120xf32>
    %5 = arith.addf %2, %4 : vector<4x120xf32>
    %cst_5 = arith.constant 0.000000e+00 : f32
    %6 = vector.broadcast %cst_5 : f32 to vector<4x120xf32>
    %7 = arith.maximumf %5, %6 : vector<4x120xf32>
    %c0_6 = arith.constant 0 : index
    %c0_7 = arith.constant 0 : index
    %8 = vector.load %arg4[%c0_6, %c0_7] : memref<120x84xf32, #tpu.memory_space<vmem>>, vector<120x84xf32>
    %cst_8 = arith.constant dense<0.000000e+00> : vector<4x84xf32>
    %9 = tpu.matmul %7, %8, %cst_8 {dimension_numbers = #tpu.dot_dimension_numbers<[1], [0], [0], [1], [0, 0, 1, 1], [], []>} : vector<4x120xf32>, vector<120x84xf32>, vector<4x84xf32> -> vector<4x84xf32>
    %c0_9 = arith.constant 0 : index
    %c0_10 = arith.constant 0 : index
    %10 = vector.load %arg5[%c0_9, %c0_10] : memref<1x84xf32, #tpu.memory_space<vmem>>, vector<1x84xf32>
    %11 = vector.broadcast %10 : vector<1x84xf32> to vector<4x84xf32>
    %12 = arith.addf %9, %11 : vector<4x84xf32>
    %cst_11 = arith.constant 0.000000e+00 : f32
    %13 = vector.broadcast %cst_11 : f32 to vector<4x84xf32>
    %14 = arith.maximumf %12, %13 : vector<4x84xf32>
    %c0_12 = arith.constant 0 : index
    %c0_13 = arith.constant 0 : index
    %15 = vector.load %arg6[%c0_12, %c0_13] : memref<84x128xf32, #tpu.memory_space<vmem>>, vector<84x128xf32>
    %cst_14 = arith.constant dense<0.000000e+00> : vector<4x128xf32>
    %16 = tpu.matmul %14, %15, %cst_14 {dimension_numbers = #tpu.dot_dimension_numbers<[1], [0], [0], [1], [0, 0, 1, 1], [], []>} : vector<4x84xf32>, vector<84x128xf32>, vector<4x128xf32> -> vector<4x128xf32>
    %c0_15 = arith.constant 0 : index
    %c0_16 = arith.constant 0 : index
    %17 = vector.load %arg7[%c0_15, %c0_16] : memref<1x128xf32, #tpu.memory_space<vmem>>, vector<1x128xf32>
    %18 = vector.broadcast %17 : vector<1x128xf32> to vector<4x128xf32>
    %19 = arith.addf %16, %18 : vector<4x128xf32>
    %c0_17 = arith.constant 0 : index
    %c0_18 = arith.constant 0 : index
    %20 = vector.load %arg8[%c0_17, %c0_18] : memref<4x128xf32, #tpu.memory_space<vmem>>, vector<4x128xf32>
    tpu.vector_store %arg8[%c0_17, %c0_18], %19 {strides = array<i32>} : memref<4x128xf32, #tpu.memory_space<vmem>>, vector<4x128xf32>,
    return
  }
  func.func @transform_0(%arg0: i32) -> (i32, i32) {
    %c0_i32 = arith.constant 0 : i32
    %c0_i32_0 = arith.constant 0 : i32
    return %arg0, %c0_i32 : i32, i32
  }
  func.func @transform_1(%arg0: i32) -> (i32, i32) {
    %c0_i32 = arith.constant 0 : i32
    %c0_i32_0 = arith.constant 0 : i32
    %c0_i32_1 = arith.constant 0 : i32
    return %c0_i32, %c0_i32_0 : i32, i32
  }
  func.func @transform_2(%arg0: i32) -> (i32, i32) {
    %c0_i32 = arith.constant 0 : i32
    %c0_i32_0 = arith.constant 0 : i32
    %c0_i32_1 = arith.constant 0 : i32
    return %c0_i32, %c0_i32_0 : i32, i32
  }
  func.func @transform_3(%arg0: i32) -> (i32, i32) {
    %c0_i32 = arith.constant 0 : i32
    %c0_i32_0 = arith.constant 0 : i32
    %c0_i32_1 = arith.constant 0 : i32
    return %c0_i32, %c0_i32_0 : i32, i32
  }
  func.func @transform_4(%arg0: i32) -> (i32, i32) {
    %c0_i32 = arith.constant 0 : i32
    %c0_i32_0 = arith.constant 0 : i32
    %c0_i32_1 = arith.constant 0 : i32
    return %c0_i32, %c0_i32_0 : i32, i32
  }
  func.func @transform_5(%arg0: i32) -> (i32, i32) {
    %c0_i32 = arith.constant 0 : i32
    %c0_i32_0 = arith.constant 0 : i32
    %c0_i32_1 = arith.constant 0 : i32
    return %c0_i32, %c0_i32_0 : i32, i32
  }
  func.func @transform_6(%arg0: i32) -> (i32, i32) {
    %c0_i32 = arith.constant 0 : i32
    %c0_i32_0 = arith.constant 0 : i32
    %c0_i32_1 = arith.constant 0 : i32
    return %c0_i32, %c0_i32_0 : i32, i32
  }
  func.func @transform_7(%arg0: i32) -> (i32, i32) {
    %c0_i32 = arith.constant 0 : i32
    %c0_i32_0 = arith.constant 0 : i32
    return %arg0, %c0_i32 : i32, i32
  }
}

</mosaic_0001>

<bundles_post_ra>
// kernel: lenet5_forward.3
= control target key start
LH: loop header
LB: loop body
LE: loop exit
PB: predicated region body
PF: predicated region fallthrough
CT: control target
= control target key end

     0   :  { %s1240_s12 = smov 0   ;;  %s1410_s0 = inlined_call_operand.vmem [shape: f32[4,1024], index: 0, kind: input, shape index: {}]   ;;  %s1411_s1 = inlined_call_operand.vmem [shape: f32[4,8,36], index: 1, kind: input, shape index: {}]   ;;  %s1412_s2 = inlined_call_operand.vmem [shape: f32[8,1], index: 2, kind: input, shape index: {}]   ;;  %s1413_s3 = inlined_call_operand.vmem [shape: f32[8,1024], index: 3, kind: output, shape index: {}]  }
   0x1 LB: > { %s1079_s13 = sadd.s32 4294967295, %s1208_s12   ;;  %p1083_p0 = scmp.ge.s32.totalorder %s1208_s12, 1  ;;  %s1208_s12 = sphi %s1240_s12, %s13_s12  }
   0x2   : > { %p138_p1 = scmp.lt.s32.totalorder %s1208_s12, 3 }
   0x4   : > { %p139_p2 = pnand %p1083_p0, %p138_p1 }
   0x5   : > { %s1084_s14 = sshll.u32 (!%p139_p2), %s1079_s13, 2  ;;  %s1210_s19 = smov (!%p139_p2), 112   ;;  %v1218_v4 = vmov (!%p139_p2), 0.0   ;;  %v1005_v5 = vld [vmem:[%s1412_s2] sm:$0xff] (!%p139_p2)  ;;  %v1219_v6 = vmov (!%p139_p2), 0   ;;  %v194_v7 = vlaneseq (!%p139_p2)  ;;  %vm397_vm8 = vcmask (!%p139_p2), 1043456  }
   0x6   : > { %142 = sbr.rel (%p139_p2) target bundleno = 455 (0x1c7), region = 32  ;;  %p163_p3 = scmp.lt.s32.totalorder (!%p139_p2), %s1084_s14, 7  ;;  %474 = vmatprep.mubr.f32.mxu0 (!%p139_p2), %v1218_v4  ;;  %545 = vmatprep.mubr.f32.mxu1 (!%p139_p2), %v1218_v4  ;;  %vm393_vm9 = vcmask (!%p139_p2), 293888  }
   0x7   : > { %s1211_s20 = smov (!%p139_p2), 127   ;;  %s1212_s21 = smov (!%p139_p2), 126   ;;  %1199 = vset.pattern.permute.xlu0 (!%p139_p2), %v1219_v6  ;;  %v1259_v10 = vand.u32 (!%p139_p2), 127, %v194_v7 }
   0x8   : > { %s1213_s22 = smov (!%p139_p2), 110   ;;  %s1214_s23 = smov (!%p139_p2), 95  }
   0x9   : > { %s1215_s24 = smov (!%p139_p2), 111   ;;  %s1216_s25 = smov (!%p139_p2), 96   ;;  %vm242_vm0 = vcmp.lt.s32.totalorder (!%p139_p2), %v1259_v10, 112  ;;  %vm196_vm1 = vcmp.lt.s32.totalorder (!%p139_p2), %v1259_v10, 127  ;;  %vm225_vm2 = vcmp.lt.s32.totalorder (!%p139_p2), %v1259_v10, 126  ;;  %vm288_vm3 = vcmp.lt.s32.totalorder (!%p139_p2), %v1259_v10, 110 }
   0xa   : > { %s1217_s26 = smov (!%p139_p2), 94   ;;  %vm334_vm4 = vcmp.lt.s32.totalorder (!%p139_p2), %v1259_v10, 95  ;;  %vm271_vm5 = vcmp.lt.s32.totalorder (!%p139_p2), %v1259_v10, 111  ;;  %vm317_vm6 = vcmp.lt.s32.totalorder (!%p139_p2), %v1259_v10, 96  ;;  %vm363_vm7 = vcmp.lt.s32.totalorder (!%p139_p2), %v1259_v10, 94 }
   0xd   : > { %s1415_s14 = smov (!%p163_p3, %s1084_s14), 7 }
   0xe   : > { %s1085_s15 = sshll.u32 %s1415_s14, 2  ;;  %s1087_s10 = sshll.u32 %s1415_s14, 3 }
   0xf   : > { %s166_s18 = scalar_lea.vmem %s1410_s0, %s1085_s15  ;;  %s172_s15 = scalar_lea.vmem %s1413_s3, %s1087_s10 }
  0x10   : > { %v175_v0 = vld [vmem:[%s166_s18 + $0x8] sm:$0xff]  ;;  %v174_v1 = vld [vmem:[%s166_s18] sm:$0xff] }
  0x11   : > { %238 = vrot.lane.b32.xlu1 %v175_v0, %s1210_s19  ;;  %184 = vst [vmem:[#allocation2 + $0x10] sm:$0xf] %v175_v0  ;;  %190 = vrot.lane.b32.xlu0 %v175_v0, %s1211_s20  ;;  %182 = vst [vmem:[#allocation2] sm:$0xf] %v174_v1  ;;  %v178_v2 = vcombine.high %v174_v1, %v174_v1  ;;  %v179_v3 = vcombine.high %v175_v0, %v175_v0 }
  0x13   : > { %183 = vst [vmem:[#allocation2 + $0x8] sm:$0xf] %v178_v2  ;;  %185 = vst [vmem:[#allocation2 + $0x18] sm:$0xf] %v179_v3 }
  0x15   : > { %234 = vrot.lane.b32.xlu1 %v174_v1, %s1210_s19  ;;  %186 = vrot.lane.b32.xlu0 %v174_v1, %s1211_s20 }
  0x19   : > { %236 = vrot.lane.b32.xlu1 %v178_v2, %s1210_s19  ;;  %188 = vrot.lane.b32.xlu0 %v178_v2, %s1211_s20 }
  0x1d   : > { %219 = vrot.lane.b32.xlu1 %v178_v2, %s1212_s21  ;;  %192 = vrot.lane.b32.xlu0 %v179_v3, %s1211_s20 }
  0x21   : > { %240 = vrot.lane.b32.xlu1 %v179_v3, %s1210_s19  ;;  %221 = vrot.lane.b32.xlu0 %v175_v0, %s1212_s21 }
  0x25   : > { %223 = vrot.lane.b32.xlu1 %v179_v3, %s1212_s21  ;;  %217 = vrot.lane.b32.xlu0 %v174_v1, %s1212_s21 }
  0x29   : > { %284 = vrot.lane.b32.xlu1 %v175_v0, %s1213_s22  ;;  %282 = vrot.lane.b32.xlu0 %v178_v2, %s1213_s22 }
  0x2d   : > { %330 = vrot.lane.b32.xlu1 %v175_v0, %s1214_s23  ;;  %328 = vrot.lane.b32.xlu0 %v178_v2, %s1214_s23 }
  0x31   : > { %326 = vrot.lane.b32.xlu1 %v174_v1, %s1214_s23  ;;  %280 = vrot.lane.b32.xlu0 %v174_v1, %s1213_s22 }
  0x35   : > { %267 = vrot.lane.b32.xlu1 %v175_v0, %s1215_s24  ;;  %265 = vrot.lane.b32.xlu0 %v178_v2, %s1215_s24 }
  0x39   : > { %311 = vrot.lane.b32.xlu1 %v178_v2, %s1216_s25  ;;  %286 = vrot.lane.b32.xlu0 %v179_v3, %s1213_s22 }
  0x3d   : > { %332 = vrot.lane.b32.xlu1 %v179_v3, %s1214_s23  ;;  %313 = vrot.lane.b32.xlu0 %v175_v0, %s1216_s25 }
  0x41   : > { %309 = vrot.lane.b32.xlu1 %v174_v1, %s1216_s25  ;;  %263 = vrot.lane.b32.xlu0 %v174_v1, %s1215_s24 }
  0x45   : > { %315 = vrot.lane.b32.xlu1 %v179_v3, %s1216_s25  ;;  %269 = vrot.lane.b32.xlu0 %v179_v3, %s1215_s24 }
  0x49   : > { %359 = vrot.lane.b32.xlu1 %v175_v0, %s1217_s26  ;;  %357 = vrot.lane.b32.xlu0 %v178_v2, %s1217_s26 }
  0x4d   : > { %361 = vrot.lane.b32.xlu1 %v179_v3, %s1217_s26  ;;  %355 = vrot.lane.b32.xlu0 %v174_v1, %s1217_s26 }
  0x51   : > { %1008 = vperm.xlu0 %1199, %v1005_v5  }
  0x83   : > { %v239_v8 = vpop.permute.xlu1 %238  ;;  %v191_v9 = vpop.permute.xlu0 %190 }
  0x87   : > { %v235_v11 = vpop.permute.xlu1 %234  ;;  %v187_v12 = vpop.permute.xlu0 %186 }
  0x8b   : > { %v237_v13 = vpop.permute.xlu1 %236  ;;  %v189_v14 = vpop.permute.xlu0 %188 }
  0x8c   : > { %v244_v15 = vsel %vm242_vm0, %v237_v13, %v239_v8  ;;  %v245_v16 = vsel %vm242_vm0, %v235_v11, %v237_v13  ;;  %v198_v17 = vsel %vm196_vm1, %v189_v14, %v191_v9  ;;  %v199_v18 = vsel %vm196_vm1, %v187_v12, %v189_v14 }
  0x8d   : > { %v251_v19 = vrot.slane %v245_v16, 4  ;;  %v252_v20 = vrot.slane %v244_v15, 4  ;;  %v205_v21 = vrot.slane %v199_v18, 4  ;;  %v206_v22 = vrot.slane %v198_v17, 4 }
  0x8f   : > { %259 = vst [vmem:[#allocation2 + $0x20] sm:$0xf0] %v251_v19  ;;  %260 = vst [vmem:[#allocation2 + $0x28] sm:$0xf0] %v252_v20  ;;  %v220_v23 = vpop.permute.xlu1 %219  ;;  %v193_v24 = vpop.permute.xlu0 %192 }
  0x90   : > { %213 = vst [vmem:[#allocation2] sm:$0xf0] %v205_v21  ;;  %214 = vst [vmem:[#allocation2 + $0x8] sm:$0xf0] %v206_v22  ;;  %v197_v25 = vsel %vm196_vm1, %v191_v9, %v193_v24  ;;  %v200_v26 = vsel %vm196_vm1, %v193_v24, %v187_v12 }
  0x91   : > { %v207_v27 = vrot.slane %v197_v25, 4  ;;  %v208_v28 = vrot.slane %v200_v26, 4 }
  0x93   : > { %215 = vst [vmem:[#allocation2 + $0x10] sm:$0xf0] %v207_v27  ;;  %216 = vst [vmem:[#allocation2 + $0x18] sm:$0xf0] %v208_v28  ;;  %v241_v29 = vpop.permute.xlu1 %240  ;;  %v222_v30 = vpop.permute.xlu0 %221 }
  0x94   : > { %v243_v31 = vsel %vm242_vm0, %v239_v8, %v241_v29  ;;  %v246_v32 = vsel %vm242_vm0, %v241_v29, %v235_v11  ;;  %v227_v33 = vsel %vm225_vm2, %v220_v23, %v222_v30 }
  0x95   : > { %v253_v34 = vrot.slane %v243_v31, 4  ;;  %v254_v35 = vrot.slane %v246_v32, 4  ;;  %231 = vst [vmem:[#allocation2 + $0x28] sm:$0xf] %v227_v33 }
  0x97   : > { %261 = vst [vmem:[#allocation2 + $0x30] sm:$0xf0] %v253_v34  ;;  %262 = vst [vmem:[#allocation2 + $0x38] sm:$0xf0] %v254_v35  ;;  %v224_v36 = vpop.permute.xlu1 %223  ;;  %v218_v37 = vpop.permute.xlu0 %217  ;;  %v373_v44 = vld [vmem:[#allocation2 + $0x8] sm:$0xff]  ;;  %v372_v51 = vld [vmem:[#allocation2] sm:$0xff] }
  0x98   : > { %v226_v38 = vsel %vm225_vm2, %v222_v30, %v224_v36  ;;  %v228_v39 = vsel %vm225_vm2, %v218_v37, %v220_v23  ;;  %v229_v40 = vsel %vm225_vm2, %v224_v36, %v218_v37 }
  0x99   : > { %232 = vst [vmem:[#allocation2 + $0x30] sm:$0xf] %v226_v38  ;;  %230 = vst [vmem:[#allocation2 + $0x20] sm:$0xf] %v228_v39 }
  0x9a   : > { %233 = vst [vmem:[#allocation2 + $0x38] sm:$0xf] %v229_v40  ;;  %v375_v50 = vld [vmem:[#allocation2 + $0x18] sm:$0xff]  ;;  %v374_v52 = vld [vmem:[#allocation2 + $0x10] sm:$0xff] }
  0x9b   : > { %v285_v41 = vpop.permute.xlu1 %284  ;;  %v283_v42 = vpop.permute.xlu0 %282 }
  0x9c   : > { %v290_v43 = vsel %vm288_vm3, %v283_v42, %v285_v41  ;;  %v377_v45 = vld [vmem:[#allocation2 + $0x28] sm:$0xff] }
  0x9d   : > { %v298_v46 = vrot.slane %v290_v43, 4  ;;  %v1292_v47 = vpack.c.bf16 %v377_v45, %v373_v44 }
  0x9f   : > { %306 = vst [vmem:[#allocation2 + $0x48] sm:$0xf0] %v298_v46  ;;  %v331_v48 = vpop.permute.xlu1 %330  ;;  %v329_v49 = vpop.permute.xlu0 %328  ;;  %1118 = vmatprep.subr.bf16.mxu0 %v1292_v47 }
  0xa0   : > { %v336_v53 = vsel %vm334_vm4, %v329_v49, %v331_v48  ;;  %v376_v55 = vld [vmem:[#allocation2 + $0x20] sm:$0xff]  ;;  %v378_v56 = vld [vmem:[#allocation2 + $0x30] sm:$0xff] }
  0xa1   : > { %v379_v54 = vld [vmem:[#allocation2 + $0x38] sm:$0xff]  ;;  %v344_v57 = vrot.slane %v336_v53, 4  ;;  %v1299_v59 = vpack.c.bf16 %v376_v55, %v372_v51  ;;  %v1301_v60 = vpack.c.bf16 %v378_v56, %v374_v52  ;;  %v392_v52 = vld [vmem:[%s1411_s1] sm:$0xff]  ;;  %v1094_v56 = vld [vmem:[%s1411_s1 + $0x8] sm:$0xff] }
  0xa2   : > { %v1297_v58 = vpack.c.bf16 %v379_v54, %v375_v50 }
  0xa3   : > { %352 = vst [vmem:[#allocation2 + $0x68] sm:$0xf0] %v344_v57  ;;  %v327_v61 = vpop.permute.xlu1 %326  ;;  %v281_v62 = vpop.permute.xlu0 %280  ;;  %1120 = vmatpush1.bf16.msra.mxu0 %v1299_v59  ;;  %v1101_v57 = vld [vmem:[%s1411_s1 + $0x10] sm:$0xff] }
  0xa4   : > { %1126 = vmatprep.subr.bf16.mxu1 %v1297_v58  ;;  %v337_v63 = vsel %vm334_vm4, %v327_v61, %v329_v49  ;;  %v291_v0 = vsel %vm288_vm3, %v281_v62, %v283_v42 }
  0xa5   : > { %1128 = vmatpush1.bf16.msra.mxu1 %v1301_v60  ;;  %v343_v1 = vrot.slane %v337_v63, 4  ;;  %v297_v2 = vrot.slane %v291_v0, 4 }
  0xa7   : > { %351 = vst [vmem:[#allocation2 + $0x60] sm:$0xf0] %v343_v1  ;;  %305 = vst [vmem:[#allocation2 + $0x40] sm:$0xf0] %v297_v2  ;;  %v268_v3 = vpop.permute.xlu1 %267  ;;  %v266_v5 = vpop.permute.xlu0 %265 }
  0xa8   : > { %v273_v6 = vsel %vm271_vm5, %v266_v5, %v268_v3 }
  0xa9   : > { %277 = vst [vmem:[#allocation2 + $0x48] sm:$0xf] %v273_v6 }
  0xab   : > { %v312_v7 = vpop.permute.xlu1 %311  ;;  %v287_v8 = vpop.permute.xlu0 %286 }
  0xac   : > { %v289_v9 = vsel %vm288_vm3, %v285_v41, %v287_v8  ;;  %v292_v11 = vsel %vm288_vm3, %v287_v8, %v281_v62 }
  0xad   : > { %v299_v12 = vrot.slane %v289_v9, 4  ;;  %v300_v13 = vrot.slane %v292_v11, 4 }
  0xaf   : > { %307 = vst [vmem:[#allocation2 + $0x50] sm:$0xf0] %v299_v12  ;;  %308 = vst [vmem:[#allocation2 + $0x58] sm:$0xf0] %v300_v13  ;;  %v333_v14 = vpop.permute.xlu1 %332  ;;  %v314_v15 = vpop.permute.xlu0 %313 }
  0xb0   : > { %v335_v16 = vsel %vm334_vm4, %v331_v48, %v333_v14  ;;  %v338_v17 = vsel %vm334_vm4, %v333_v14, %v327_v61  ;;  %v319_v18 = vsel %vm317_vm6, %v312_v7, %v314_v15  ;;  %v381_v31 = vld [vmem:[#allocation2 + $0x48] sm:$0xff] }
  0xb1   : > { %v345_v19 = vrot.slane %v335_v16, 4  ;;  %v346_v20 = vrot.slane %v338_v17, 4  ;;  %323 = vst [vmem:[#allocation2 + $0x68] sm:$0xf] %v319_v18 }
  0xb3   : > { %353 = vst [vmem:[#allocation2 + $0x70] sm:$0xf0] %v345_v19  ;;  %354 = vst [vmem:[#allocation2 + $0x78] sm:$0xf0] %v346_v20  ;;  %v310_v21 = vpop.permute.xlu1 %309  ;;  %v264_v22 = vpop.permute.xlu0 %263 }
  0xb4   : > { %v320_v23 = vsel %vm317_vm6, %v310_v21, %v312_v7  ;;  %v274_v24 = vsel %vm271_vm5, %v264_v22, %v266_v5 }
  0xb5   : > { %322 = vst [vmem:[#allocation2 + $0x60] sm:$0xf] %v320_v23  ;;  %276 = vst [vmem:[#allocation2 + $0x40] sm:$0xf] %v274_v24 }
  0xb7   : > { %v316_v25 = vpop.permute.xlu1 %315  ;;  %v270_v26 = vpop.permute.xlu0 %269 }
  0xb8   : > { %v318_v27 = vsel %vm317_vm6, %v314_v15, %v316_v25  ;;  %v321_v28 = vsel %vm317_vm6, %v316_v25, %v310_v21  ;;  %v272_v29 = vsel %vm271_vm5, %v268_v3, %v270_v26  ;;  %v275_v30 = vsel %vm271_vm5, %v270_v26, %v264_v22  ;;  %v385_v32 = vld [vmem:[#allocation2 + $0x68] sm:$0xff] }
  0xb9   : > { %324 = vst [vmem:[#allocation2 + $0x70] sm:$0xf] %v318_v27  ;;  %325 = vst [vmem:[#allocation2 + $0x78] sm:$0xf] %v321_v28  ;;  %v1337_v33 = vpack.c.bf16 %v385_v32, %v381_v31 }
  0xba   : > { %278 = vst [vmem:[#allocation2 + $0x50] sm:$0xf] %v272_v29  ;;  %279 = vst [vmem:[#allocation2 + $0x58] sm:$0xf] %v275_v30 }
  0xbb   : > { %v360_v34 = vpop.permute.xlu1 %359  ;;  %v358_v35 = vpop.permute.xlu0 %357  ;;  %1122 = vmatprep.subr.bf16.mxu0 %v1337_v33 }
  0xbc   : > { %v365_v36 = vsel %vm363_vm7, %v358_v35, %v360_v34  ;;  %v380_v37 = vld [vmem:[#allocation2 + $0x40] sm:$0xff] }
  0xbd   : > { %v384_v38 = vld [vmem:[#allocation2 + $0x60] sm:$0xff]  ;;  %369 = vst [vmem:[#allocation2 + $0x88] sm:$0xf] %v365_v36 }
  0xbe   : > { %v1340_v39 = vpack.c.bf16 %v384_v38, %v380_v37 }
  0xbf   : > { %v362_v40 = vpop.permute.xlu1 %361  ;;  %v356_v41 = vpop.permute.xlu0 %355 }
  0xc0   : > { %1124 = vmatpush1.bf16.msra.mxu0 %v1340_v39  ;;  %v364_v42 = vsel %vm363_vm7, %v360_v34, %v362_v40  ;;  %v366_v43 = vsel %vm363_vm7, %v356_v41, %v358_v35  ;;  %v367_v44 = vsel %vm363_vm7, %v362_v40, %v356_v41  ;;  %v387_v45 = vld [vmem:[#allocation2 + $0x78] sm:$0xff]  ;;  %v386_v49 = vld [vmem:[#allocation2 + $0x70] sm:$0xff] }
  0xc1   : > { %v383_v10 = vld [vmem:[#allocation2 + $0x58] sm:$0xff]  ;;  %v382_v46 = vld [vmem:[#allocation2 + $0x50] sm:$0xff]  ;;  %370 = vst [vmem:[#allocation2 + $0x90] sm:$0xf] %v364_v42  ;;  %368 = vst [vmem:[#allocation2 + $0x80] sm:$0xf] %v366_v43 }
  0xc2   : > { %371 = vst [vmem:[#allocation2 + $0x98] sm:$0xf] %v367_v44  ;;  %v1129_v48 = vpack.c.bf16 %v387_v45, %v383_v10  ;;  %v1131_v50 = vpack.c.bf16 %v386_v49, %v382_v46 }
  0xc4   : > { %1130 = vmatprep.subr.bf16.mxu1 %v1129_v48  ;;  %v389_v51 = vld [vmem:[#allocation2 + $0x88] sm:$0xf] }
  0xc5   : > { %1132 = vmatpush1.bf16.msra.mxu1 %v1131_v50  ;;  %1088 = vmatprep.subr.msk.mxu0 %vm397_vm8, %v389_v51 }
  0xc8   : > { %v388_v53 = vld [vmem:[#allocation2 + $0x80] sm:$0xf]  ;;  %v390_v55 = vld [vmem:[#allocation2 + $0x90] sm:$0xf] }
  0xc9   : > { %v391_v54 = vld [vmem:[#allocation2 + $0x98] sm:$0xf]  ;;  %1089 = vmatpush1.msk.msra.mxu0 %vm397_vm8, %v388_v53 }
  0xca   : > { %1091 = vmatprep.subr.msk.mxu1 %vm397_vm8, %v391_v54  ;;  %1090 = vmatmul.mubr.msk.f32.vlgmr.msra.gmra.mrb[0].mxu0 %vm393_vm9, %v392_v52 }
  0xcb   : > { %1092 = vmatpush1.msk.msra.mxu1 %vm397_vm8, %v390_v55  ;;  %1134 = vmatprep.subr.bf16.mxu0 %v1292_v47 }
  0xcc   : > { %1142 = vmatprep.subr.bf16.mxu1 %v1297_v58  ;;  %1136 = vmatpush1.bf16.msra.mxu0 %v1299_v59 }
  0xcd   : > { %1093 = vmatmul.mubr.msk.f32.vlgmr.msra.gmra.mrb[0].mxu1 %vm393_vm9, %v392_v52  ;;  %1138 = vmatprep.subr.bf16.mxu0 %v1337_v33 }
  0xce   : > { %1144 = vmatpush1.bf16.msra.mxu1 %v1301_v60  ;;  %621 = vmatprep.mubr.f32.mxu0 %v1218_v4 }
  0xcf   : > { %1146 = vmatprep.subr.bf16.mxu1 %v1129_v48  ;;  %692 = vmatprep.mubr.f32.mxu1 %v1218_v4 }
  0xd0   : > { %1140 = vmatpush1.bf16.msra.mxu0 %v1340_v39  ;;  %v1009_v16 = vpop.permute.xlu0 %1008 }
  0xd1   : > { %1095 = vmatprep.subr.msk.mxu0 %vm397_vm8, %v389_v51 }
  0xd2   : > { %1148 = vmatpush1.bf16.msra.mxu1 %v1131_v50 }
  0xd3   : > { %1098 = vmatprep.subr.msk.mxu1 %vm397_vm8, %v391_v54 }
  0xd4   : > { %1096 = vmatpush1.msk.msra.mxu0 %vm397_vm8, %v388_v53 }
  0xd5   : > { %1097 = vmatmul.mubr.msk.f32.vlgmr.msra.gmra.mrb[2].mxu0 %vm393_vm9, %v1094_v56  ;;  %1150 = vmatprep.subr.bf16.mxu0 %v1292_v47 }
  0xd6   : > { %1099 = vmatpush1.msk.msra.mxu1 %vm397_vm8, %v390_v55  ;;  %1152 = vmatpush1.bf16.msra.mxu0 %v1299_v59 }
  0xd7   : > { %1100 = vmatmul.mubr.msk.f32.vlgmr.msra.gmra.mrb[2].mxu1 %vm393_vm9, %v1094_v56  ;;  %1158 = vmatprep.subr.bf16.mxu1 %v1297_v58 }
  0xd8   : > { %1154 = vmatprep.subr.bf16.mxu0 %v1337_v33  ;;  %1160 = vmatpush1.bf16.msra.mxu1 %v1301_v60 }
  0xd9   : > { %1162 = vmatprep.subr.bf16.mxu1 %v1129_v48  ;;  %772 = vmatprep.mubr.f32.mxu0 %v1218_v4 }
  0xda   : > { %843 = vmatprep.mubr.f32.mxu1 %v1218_v4  ;;  %1156 = vmatpush1.bf16.msra.mxu0 %v1340_v39 }
  0xdb   : > { %1102 = vmatprep.subr.msk.mxu0 %vm397_vm8, %v389_v51 }
  0xdc   : > { %1164 = vmatpush1.bf16.msra.mxu1 %v1131_v50 }
  0xdd   : > { %1105 = vmatprep.subr.msk.mxu1 %vm397_vm8, %v391_v54 }
  0xde   : > { %1103 = vmatpush1.msk.msra.mxu0 %vm397_vm8, %v388_v53 }
  0xdf   : > { %1104 = vmatmul.mubr.msk.f32.vlgmr.msra.gmra.mrb[4].mxu0 %vm393_vm9, %v1101_v57  ;;  %1166 = vmatprep.subr.bf16.mxu0 %v1292_v47  ;;  %v1108_v47 = vld [vmem:[%s1411_s1 + $0x18] sm:$0xff] }
  0xe0   : > { %1106 = vmatpush1.msk.msra.mxu1 %vm397_vm8, %v390_v55  ;;  %1168 = vmatpush1.bf16.msra.mxu0 %v1299_v59 }
  0xe1   : > { %1107 = vmatmul.mubr.msk.f32.vlgmr.msra.gmra.mrb[4].mxu1 %vm393_vm9, %v1101_v57  ;;  %1174 = vmatprep.subr.bf16.mxu1 %v1297_v58 }
  0xe2   : > { %1170 = vmatprep.subr.bf16.mxu0 %v1337_v33  ;;  %1176 = vmatpush1.bf16.msra.mxu1 %v1301_v60 }
  0xe3   : > { %1178 = vmatprep.subr.bf16.mxu1 %v1129_v48  ;;  %923 = vmatprep.mubr.f32.mxu0 %v1218_v4 }
  0xe4   : > { %994 = vmatprep.mubr.f32.mxu1 %v1218_v4  ;;  %1172 = vmatpush1.bf16.msra.mxu0 %v1340_v39 }
  0xe5   : > { %1109 = vmatprep.subr.msk.mxu0 %vm397_vm8, %v389_v51 }
  0xe6   : > { %1180 = vmatpush1.bf16.msra.mxu1 %v1131_v50 }
  0xe7   : > { %1112 = vmatprep.subr.msk.mxu1 %vm397_vm8, %v391_v54 }
  0xe8   : > { %1110 = vmatpush1.msk.msra.mxu0 %vm397_vm8, %v388_v53 }
  0xe9   : > { %1111 = vmatmul.mubr.msk.f32.vlgmr.msra.gmra.mrb[6].mxu0 %vm393_vm9, %v1108_v47 }
  0xea   : > { %1113 = vmatpush1.msk.msra.mxu1 %vm397_vm8, %v390_v55 }
  0xeb   : > { %1114 = vmatmul.mubr.msk.f32.vlgmr.msra.gmra.mrb[6].mxu1 %vm393_vm9, %v1108_v47 }
 0x19d   : > { %v476_v4 = vpop.f32.mrb[0].mxu0 }
 0x19e   : > { %v478_v58 = vpop.f32.mrb[1].mxu0 }
 0x1a0   : > { %v547_v59 = vpop.f32.mrb[0].mxu1 }
 0x1a1   : > { %v549_v60 = vpop.f32.mrb[1].mxu1 }
 0x1a8   : > { %v623_v61 = vpop.f32.mrb[2].mxu0 }
 0x1a9   : > { %v699_v62 = vmax.f32 %v476_v4, %v623_v61  ;;  %v625_v63 = vpop.f32.mrb[3].mxu0 }
 0x1aa   : > { %v694_v0 = vpop.f32.mrb[2].mxu1  ;;  %v700_v1 = vmax.f32 %v478_v58, %v625_v63 }
 0x1ab   : > { %v701_v2 = vmax.f32 %v547_v59, %v694_v0  ;;  %v696_v3 = vpop.f32.mrb[3].mxu1 }
 0x1ac   : > { %v702_v5 = vmax.f32 %v549_v60, %v696_v3 }
 0x1b2   : > { %v774_v6 = vpop.f32.mrb[4].mxu0 }
 0x1b3   : > { %v850_v7 = vmax.f32 %v699_v62, %v774_v6  ;;  %v776_v8 = vpop.f32.mrb[5].mxu0 }
 0x1b4   : > { %v845_v9 = vpop.f32.mrb[4].mxu1  ;;  %v851_v11 = vmax.f32 %v700_v1, %v776_v8 }
 0x1b5   : > { %v852_v12 = vmax.f32 %v701_v2, %v845_v9  ;;  %v847_v13 = vpop.f32.mrb[5].mxu1 }
 0x1b6   : > { %v853_v14 = vmax.f32 %v702_v5, %v847_v13 }
 0x1bc   : > { %v925_v15 = vpop.f32.mrb[6].mxu0 }
 0x1bd   : > { %v1001_v17 = vmax.f32 %v850_v7, %v925_v15  ;;  %v927_v18 = vpop.f32.mrb[7].mxu0 }
 0x1be   : > { %v996_v19 = vpop.f32.mrb[6].mxu1  ;;  %v1002_v20 = vmax.f32 %v851_v11, %v927_v18 }
 0x1bf   : > { %v1003_v21 = vmax.f32 %v852_v12, %v996_v19  ;;  %v998_v22 = vpop.f32.mrb[7].mxu1  ;;  %v1011_v24 = vadd.f32 %v1009_v16, %v1001_v17 }
 0x1c0   : > { %v1004_v23 = vmax.f32 %v853_v14, %v998_v22  ;;  %v1012_v25 = vadd.f32 %v1009_v16, %v1002_v20 }
 0x1c1   : > { %v1013_v26 = vadd.f32 %v1009_v16, %v1003_v21  ;;  %v1015_v28 = vmax.f32 %v1011_v24, 0.0 }
 0x1c2   : > { %v1014_v27 = vadd.f32 %v1009_v16, %v1004_v23  ;;  %v1016_v29 = vmax.f32 %v1012_v25, 0.0 }
 0x1c3   : > { %v1017_v30 = vmax.f32 %v1013_v26, 0.0  ;;  %1019 = vst [vmem:[%s172_s15] sm:$0xff] %v1015_v28 }
 0x1c4   : > { %v1018_v31 = vmax.f32 %v1014_v27, 0.0  ;;  %1020 = vst [vmem:[%s172_s15 + $0x8] sm:$0xff] %v1016_v29 }
 0x1c5   : > { %1021 = vst [vmem:[%s172_s15 + $0x10] sm:$0xff] %v1017_v30 }
 0x1c6   : > { %1022 = vst [vmem:[%s172_s15 + $0x18] sm:$0xff] %v1018_v31 }
 0x1c7 PF: > { %s13_s12 = sadd.s32 1, %s1208_s12  }
 0x1c8   : > { %p10_p4 = scmp.ge.s32.totalorder %s13_s12, 4  }
 0x1ca   :  { %12 = sbr.rel (!%p10_p4) target bundleno = 1 (0x1), region = 65 }

// kernel: lenet5_forward.4
= control target key start
LH: loop header
LB: loop body
LE: loop exit
PB: predicated region body
PF: predicated region fallthrough
CT: control target
= control target key end

     0   :  { %s1102_s12 = smov 0   ;;  %s1104_s13 = smov 0   ;;  %s1368_s0 = inlined_call_operand.vmem [shape: f32[24,256], index: 0, kind: input, shape index: {}]   ;;  %s1369_s1 = inlined_call_operand.vmem [shape: f32[4,16,216], index: 1, kind: input, shape index: {}]   ;;  %s1370_s2 = inlined_call_operand.vmem [shape: f32[16,1], index: 2, kind: input, shape index: {}]   ;;  %s1371_s3 = inlined_call_operand.vmem [shape: f32[16,256], index: 3, kind: output, shape index: {}]  }
   0x1   :  { %s1106_s14 = smov 0  }
   0x2 LB: > { %s781_s15 = sadd.s32 4294967295, %s1069_s14   ;;  %s1119_s16 = sadd.s32 1, %s1069_s14   ;;  %s1069_s14 = sphi %s1106_s14, %s1375_s14   ;;  %s1065_s13 = sphi %s1104_s13, %s1374_s13   ;;  %s1061_s12 = sphi %s1102_s12, %s1373_s12  }
   0x3   : > { %s17_s17 = ssub.s32 %s1069_s14, %s1119_s16  ;;  %s20_s18 = sadd.s32 1, %s1065_s13 }
   0x4   : > { %p18_p0 = scmp.eq.s32.totalorder %s17_s17, 0  ;;  %p27_p1 = scmp.ne.s32.totalorder %s1065_s13, %s1061_s12 }
   0x5   : > { %p28_p2 = scmp.eq.s32.totalorder %s1069_s14, 0  ;;  %p99_p3 = scmp.eq.s32.totalorder %s781_s15, 1 }
   0x6   : > { %s1130_s19 = scalar_select %p18_p0, %s1065_s13, %s20_s18  }
   0x7   : > { %p29_p4 = por %p28_p2, %p27_p1  ;;  %p1132_p5 = por %p99_p3, %p27_p1 }
   0x8   : > { %p784_p6 = scmp.ge.s32.totalorder %s1069_s14, 2 }
   0xa   : > { %127 = sbr.rel (%p784_p6) target bundleno = 24 (0x18), region = 24 }
  0x11   : > { %130 = sbr.rel (!%p29_p4) target bundleno = 24 (0x18), region = 28  ;;  %s132_s21 = sand.u32 (%p29_p4), 1, %s1065_s13  }
  0x12   : > { %s785_s22 = sshll.u32 (%p29_p4), %s1069_s14, 3  ;;  %s968_s23 = smul.u32 (%p29_p4), 24, %s132_s21 }
  0x13   : > { %s136_s26 = scalar_lea.vmem (%p29_p4), %s1368_s0, %s785_s22 }
  0x14   : > { %v168_v0 = vld [vmem:[%s136_s26] sm:$0xff] (%p29_p4)  ;;  %v170_v1 = vld [vmem:[%s136_s26 + $0x10] sm:$0xff] (%p29_p4)  ;;  %s134_s27 = scalar_lea.vmem (%p29_p4), [#allocation3], %s968_s23 }
  0x15   : > { %v172_v2 = vld [vmem:[%s136_s26 + $0x20] sm:$0xff] (%p29_p4)  ;;  %169 = vst [vmem:[%s134_s27] sm:$0xff] (%p29_p4), %v168_v0  ;;  %171 = vst [vmem:[%s134_s27 + $0x8] sm:$0xff] (%p29_p4), %v170_v1 }
  0x16   : > { %173 = vst [vmem:[%s134_s27 + $0x10] sm:$0xff] (%p29_p4), %v172_v2 }
  0x18 PF: > { %p786_p7 = scmp.ge.s32.totalorder %s1069_s14, 1  ;;  %p178_p8 = scmp.lt.s32.totalorder %s1069_s14, 3 }
  0x1a   : > { %p179_p9 = pnand %p786_p7, %p178_p8 }
  0x1b   : > { %s185_s28 = sand.u32 (!%p179_p9), 1, %s1061_s12   ;;  %v1071_v3 = vmov (!%p179_p9), 0.0|0.0   ;;  %s1072_s4 = smov (!%p179_p9), 127   ;;  %v313_v10 = vld [vmem:[%s1369_s1 + $0x8] sm:$0xff] (!%p179_p9)  ;;  %vm316_vm0 = vcmask (!%p179_p9), 719872   ;;  %v662_v12 = vld [vmem:[%s1370_s2] sm:$0xff] (!%p179_p9) }
  0x1c   : > { %182 = sbr.rel (%p179_p9) target bundleno = 489 (0x1e9), region = 66  ;;  %812 = vmatprep.subr.bf16.mxu0 (!%p179_p9), %v1071_v3  ;;  %851 = vmatprep.subr.bf16.mxu1 (!%p179_p9), %v1071_v3  ;;  %s1073_s5 = smov (!%p179_p9), 126   ;;  %v791_v11 = vld [vmem:[%s1369_s1 + $0x28] sm:$0xff] (!%p179_p9)  ;;  %v1080_v14 = vmov (!%p179_p9), 0   ;;  %v1081_v59 = vmov (!%p179_p9), 0.0   ;;  %v312_v60 = vld [vmem:[%s1369_s1] sm:$0xff] (!%p179_p9) }
  0x1d   : > { %s969_s29 = smul.u32 (!%p179_p9), 24, %s185_s28  ;;  %s1074_s6 = smov (!%p179_p9), 120   ;;  %788 = vmatprep.mubr.msk.f32.mxu0 (!%p179_p9), %vm316_vm0, %v313_v10  ;;  %794 = vmatprep.mubr.msk.f32.mxu1 (!%p179_p9), %vm316_vm0, %v791_v11  ;;  %v663_v13 = vld [vmem:[%s1370_s2 + $0x8] sm:$0xff] (!%p179_p9)  ;;  %v790_v61 = vld [vmem:[%s1369_s1 + $0x20] sm:$0xff] (!%p179_p9)  ;;  %v315_v62 = vld [vmem:[%s1369_s1 + $0x18] sm:$0xff] (!%p179_p9) }
  0x1e   : > { %s1075_s7 = smov (!%p179_p9), 119   ;;  %s1076_s8 = smov (!%p179_p9), 118   ;;  %1045 = vset.pattern.permute.xlu0 (!%p179_p9), %v1080_v14  ;;  %1046 = vset.pattern.permute.xlu1 (!%p179_p9), %v1080_v14  ;;  %v793_v63 = vld [vmem:[%s1369_s1 + $0x38] sm:$0xff] (!%p179_p9)  ;;  %v314_v0 = vld [vmem:[%s1369_s1 + $0x10] sm:$0xff] (!%p179_p9)  ;;  %v797_v2 = vld [vmem:[%s1369_s1 + $0x48] sm:$0xff] (!%p179_p9) }
  0x1f   : > { %s187_s30 = scalar_lea.vmem (!%p179_p9), [#allocation3], %s969_s29  ;;  %s1077_s9 = smov (!%p179_p9), 112   ;;  %v792_v1 = vld [vmem:[%s1369_s1 + $0x30] sm:$0xff] (!%p179_p9) }
  0x20   : > { %v207_v4 = vld [vmem:[%s187_s30] sm:$0xff] (!%p179_p9)  ;;  %v208_v5 = vld [vmem:[%s187_s30 + $0x8] sm:$0xff] (!%p179_p9)  ;;  %v209_v6 = vld [vmem:[%s187_s30 + $0x10] sm:$0xff] (!%p179_p9)  ;;  %s1078_s10 = smov (!%p179_p9), 111   ;;  %s1079_s11 = smov (!%p179_p9), 110  }
  0x21   : > { %213 = vrot.lane.b32.xlu0 (!%p179_p9), %v207_v4, %s1072_s4  ;;  %v1005_v7 = vpack.i.bf16 (!%p179_p9), %v209_v6, %v208_v5  ;;  %v1010_v8 = vpack.i.bf16 (!%p179_p9), %v208_v5, %v207_v4  ;;  %v1149_v9 = vpack.c.bf16 (!%p179_p9), %v208_v5, %v207_v4  ;;  %v796_v5 = vld [vmem:[%s1369_s1 + $0x40] sm:$0xff] (!%p179_p9) }
  0x23   : > { %1011 = vrot.lane.b32.xlu1 %v1010_v8, %s1073_s5  ;;  %814 = vmatpush1.bf16.msra.mxu0 %v1149_v9  ;;  %s809_s12 = sshll.u32 (%p1132_p5), %s781_s15, 3 }
  0x24   : > { %853 = vmatpush1.bf16.msra.mxu1 %v1149_v9  ;;  %815 = vmatprep.subr.bf16.mxu0 %v1071_v3  ;;  %s688_s18 = scalar_lea.vmem (%p1132_p5), %s1371_s3, %s809_s12 }
  0x25   : > { %1006 = vrot.lane.b32.xlu0 %v1005_v7, %s1072_s4  ;;  %854 = vmatprep.subr.bf16.mxu1 %v1071_v3 }
  0x27   : > { %226 = vrot.lane.b32.xlu1 %v209_v6, %s1073_s5 }
  0x29   : > { %231 = vrot.lane.b32.xlu0 %v207_v4, %s1074_s6 }
  0x2b   : > { %1016 = vrot.lane.b32.xlu1 %v1005_v7, %s1074_s6 }
  0x2d   : > { %1021 = vrot.lane.b32.xlu0 %v1010_v8, %s1075_s7 }
  0x2f   : > { %244 = vrot.lane.b32.xlu1 %v209_v6, %s1075_s7 }
  0x31   : > { %249 = vrot.lane.b32.xlu0 %v207_v4, %s1076_s8 }
  0x33   : > { %1026 = vrot.lane.b32.xlu1 %v1005_v7, %s1076_s8 }
  0x35   : > { %1031 = vrot.lane.b32.xlu0 %v1010_v8, %s1077_s9 }
  0x37   : > { %262 = vrot.lane.b32.xlu1 %v209_v6, %s1077_s9 }
  0x39   : > { %267 = vrot.lane.b32.xlu0 %v207_v4, %s1078_s10  ;;  %v803_v4 = vld [vmem:[%s1369_s1 + $0x68] sm:$0xff] }
  0x3b   : > { %1036 = vrot.lane.b32.xlu1 %v1005_v7, %s1078_s10  ;;  %v805_v7 = vld [vmem:[%s1369_s1 + $0x78] sm:$0xff]  ;;  %s787_s10 = sshll.u32 %s185_s28, 4 }
  0x3d   : > { %1041 = vrot.lane.b32.xlu0 %v1010_v8, %s1079_s11  ;;  %v798_v8 = vld [vmem:[%s1369_s1 + $0x50] sm:$0xff] }
  0x3f   : > { %280 = vrot.lane.b32.xlu1 %v209_v6, %s1079_s11  ;;  %s206_s11 = scalar_lea.vmem [#allocation4], %s787_s10 }
  0x41   : > { %666 = vperm.xlu0 %1045, %v662_v12  }
  0x43   : > { %671 = vperm.xlu1 %1046, %v663_v13  }
  0x93   : > { %v214_v15 = vpop.permute.xlu0 %213 }
  0x94   : > { %v1169_v16 = vpack.c.bf16 %v214_v15, %v209_v6  ;;  %v802_v6 = vld [vmem:[%s1369_s1 + $0x60] sm:$0xff] }
  0x95   : > { %v1012_v17 = vpop.permute.xlu1 %1011 }
  0x96   : > { %817 = vmatpush1.bf16.msra.mxu0 %v1169_v16  ;;  %856 = vmatpush1.bf16.msra.mxu1 %v1169_v16  ;;  %v1014_v21 = vunpack.i.h.bf16 %v1012_v17  ;;  %v1013_v22 = vunpack.i.l.bf16 %v1012_v17 }
  0x97   : > { %v1007_v18 = vpop.permute.xlu0 %1006  ;;  %818 = vmatprep.subr.bf16.mxu0 %v1071_v3  ;;  %857 = vmatprep.subr.bf16.mxu1 %v1071_v3 }
  0x98   : > { %v1009_v19 = vunpack.i.h.bf16 %v1007_v18  ;;  %v1008_v20 = vunpack.i.l.bf16 %v1007_v18  ;;  %v1177_v25 = vpack.c.bf16 %v1014_v21, %v1013_v22 }
  0x99   : > { %v227_v23 = vpop.permute.xlu1 %226 }
  0x9a   : > { %v1175_v24 = vpack.c.bf16 %v1009_v19, %v1008_v20 }
  0x9b   : > { %v232_v26 = vpop.permute.xlu0 %231 }
  0x9c   : > { %820 = vmatpush1.bf16.msra.mxu0 %v1175_v24  ;;  %859 = vmatpush1.bf16.msra.mxu1 %v1175_v24  ;;  %v1187_v31 = vpack.c.bf16 %v232_v26, %v227_v23 }
  0x9d   : > { %821 = vmatprep.subr.bf16.mxu0 %v1071_v3  ;;  %860 = vmatprep.subr.bf16.mxu1 %v1071_v3  ;;  %v1017_v27 = vpop.permute.xlu1 %1016 }
  0x9e   : > { %v1019_v28 = vunpack.i.h.bf16 %v1017_v27  ;;  %v1018_v29 = vunpack.i.l.bf16 %v1017_v27 }
  0x9f   : > { %v1022_v30 = vpop.permute.xlu0 %1021 }
  0xa0   : > { %823 = vmatpush1.bf16.msra.mxu0 %v1177_v25  ;;  %862 = vmatpush1.bf16.msra.mxu1 %v1177_v25  ;;  %v1189_v33 = vpack.c.bf16 %v1019_v28, %v1018_v29  ;;  %v1024_v34 = vunpack.i.h.bf16 %v1022_v30  ;;  %v1023_v35 = vunpack.i.l.bf16 %v1022_v30 }
  0xa1   : > { %824 = vmatprep.subr.bf16.mxu0 %v1071_v3  ;;  %863 = vmatprep.subr.bf16.mxu1 %v1071_v3  ;;  %v245_v32 = vpop.permute.xlu1 %244 }
  0xa2   : > { %v1195_v36 = vpack.c.bf16 %v1024_v34, %v1023_v35 }
  0xa3   : > { %v250_v37 = vpop.permute.xlu0 %249 }
  0xa4   : > { %826 = vmatpush1.bf16.msra.mxu0 %v1187_v31  ;;  %865 = vmatpush1.bf16.msra.mxu1 %v1187_v31  ;;  %v1205_v42 = vpack.c.bf16 %v250_v37, %v245_v32 }
  0xa5   : > { %827 = vmatprep.subr.bf16.mxu0 %v1071_v3  ;;  %866 = vmatprep.subr.bf16.mxu1 %v1071_v3  ;;  %v1027_v38 = vpop.permute.xlu1 %1026 }
  0xa6   : > { %v1029_v39 = vunpack.i.h.bf16 %v1027_v38  ;;  %v1028_v40 = vunpack.i.l.bf16 %v1027_v38 }
  0xa7   : > { %v1032_v41 = vpop.permute.xlu0 %1031 }
  0xa8   : > { %829 = vmatpush1.bf16.msra.mxu0 %v1189_v33  ;;  %868 = vmatpush1.bf16.msra.mxu1 %v1189_v33  ;;  %v1207_v44 = vpack.c.bf16 %v1029_v39, %v1028_v40  ;;  %v1034_v45 = vunpack.i.h.bf16 %v1032_v41  ;;  %v1033_v46 = vunpack.i.l.bf16 %v1032_v41 }
  0xa9   : > { %830 = vmatprep.subr.bf16.mxu0 %v1071_v3  ;;  %869 = vmatprep.subr.bf16.mxu1 %v1071_v3  ;;  %v263_v43 = vpop.permute.xlu1 %262 }
  0xaa   : > { %v1213_v47 = vpack.c.bf16 %v1034_v45, %v1033_v46 }
  0xab   : > { %v268_v48 = vpop.permute.xlu0 %267 }
  0xac   : > { %832 = vmatpush1.bf16.msra.mxu0 %v1195_v36  ;;  %871 = vmatpush1.bf16.msra.mxu1 %v1195_v36  ;;  %v1223_v53 = vpack.c.bf16 %v268_v48, %v263_v43 }
  0xad   : > { %833 = vmatprep.subr.bf16.mxu0 %v1071_v3  ;;  %872 = vmatprep.subr.bf16.mxu1 %v1071_v3  ;;  %v1037_v49 = vpop.permute.xlu1 %1036 }
  0xae   : > { %v1039_v50 = vunpack.i.h.bf16 %v1037_v49  ;;  %v1038_v51 = vunpack.i.l.bf16 %v1037_v49 }
  0xaf   : > { %v1042_v52 = vpop.permute.xlu0 %1041 }
  0xb0   : > { %835 = vmatpush1.bf16.msra.mxu0 %v1205_v42  ;;  %874 = vmatpush1.bf16.msra.mxu1 %v1205_v42  ;;  %v1225_v54 = vpack.c.bf16 %v1039_v50, %v1038_v51  ;;  %v1044_v55 = vunpack.i.h.bf16 %v1042_v52  ;;  %v1043_v56 = vunpack.i.l.bf16 %v1042_v52 }
  0xb1   : > { %836 = vmatprep.subr.bf16.mxu0 %v1071_v3  ;;  %875 = vmatprep.subr.bf16.mxu1 %v1071_v3  ;;  %v1239_v58 = vpop.permute.xlu1 %280 }
  0xb2   : > { %v1231_v57 = vpack.c.bf16 %v1044_v55, %v1043_v56 }
  0xb4   : > { %838 = vmatpush1.bf16.msra.mxu0 %v1207_v44  ;;  %877 = vmatpush1.bf16.msra.mxu1 %v1207_v44 }
  0xb5   : > { %839 = vmatprep.subr.bf16.mxu0 %v1071_v3  ;;  %878 = vmatprep.subr.bf16.mxu1 %v1071_v3 }
  0xb8   : > { %841 = vmatpush1.bf16.msra.mxu0 %v1213_v47  ;;  %880 = vmatpush1.bf16.msra.mxu1 %v1213_v47 }
  0xb9   : > { %842 = vmatprep.subr.bf16.mxu0 %v1071_v3  ;;  %881 = vmatprep.subr.bf16.mxu1 %v1071_v3 }
  0xbc   : > { %844 = vmatpush1.bf16.msra.mxu0 %v1223_v53  ;;  %883 = vmatpush1.bf16.msra.mxu1 %v1223_v53 }
  0xbd   : > { %845 = vmatprep.subr.bf16.mxu0 %v1071_v3  ;;  %884 = vmatprep.subr.bf16.mxu1 %v1071_v3 }
  0xc0   : > { %847 = vmatpush1.bf16.msra.mxu0 %v1225_v54  ;;  %886 = vmatpush1.bf16.msra.mxu1 %v1225_v54 }
  0xc1   : > { %848 = vmatprep.subr.bf16.mxu0 %v1071_v3  ;;  %887 = vmatprep.subr.bf16.mxu1 %v1071_v3 }
  0xc4   : > { %850 = vmatpush1.bf16.msra.mxu0 %v1231_v57  ;;  %889 = vmatpush1.bf16.msra.mxu1 %v1231_v57 }
  0xc5   : > { %375 = vmatprep.subr.mxu0 %v1081_v59  ;;  %461 = vmatprep.subr.mxu1 %v1081_v59 }
  0xc8   : > { %376 = vmatpush1.msra.mxu0 %v1239_v58  ;;  %462 = vmatpush1.msra.mxu1 %v1239_v58 }
  0xc9   : > { %388 = vmatmul.mubr.f32.vlgmr.msra.gmra.mrb[0].mxu0 %v312_v60  ;;  %890 = vmatprep.subr.bf16.mxu0 %v1071_v3 }
  0xca   : > { %929 = vmatprep.subr.bf16.mxu1 %v1071_v3  ;;  %474 = vmatmul.mubr.f32.vlgmr.msra.gmra.mrb[0].mxu1 %v790_v61 }
  0xcb   : > { %892 = vmatpush1.bf16.msra.mxu0 %v1149_v9  ;;  %931 = vmatpush1.bf16.msra.mxu1 %v1149_v9  ;;  %v804_v9 = vld [vmem:[%s1369_s1 + $0x70] sm:$0xff] }
  0xcc   : > { %893 = vmatprep.subr.bf16.mxu0 %v1071_v3  ;;  %932 = vmatprep.subr.bf16.mxu1 %v1071_v3 }
  0xcd   : > { %789 = vmatprep.mubr.msk.f32.mxu0 %vm316_vm0, %v315_v62  ;;  %795 = vmatprep.mubr.msk.f32.mxu1 %vm316_vm0, %v793_v63 }
  0xce   : > { %393 = vmatmul.mubr.f32.gmra.mrb[2].mxu0 %v314_v0  ;;  %479 = vmatmul.mubr.f32.gmra.mrb[2].mxu1 %v792_v1 }
  0xcf   : > { %895 = vmatpush1.bf16.msra.mxu0 %v1169_v16  ;;  %934 = vmatpush1.bf16.msra.mxu1 %v1169_v16 }
  0xd0   : > { %896 = vmatprep.subr.bf16.mxu0 %v1071_v3  ;;  %935 = vmatprep.subr.bf16.mxu1 %v1071_v3 }
  0xd1   : > { %800 = vmatprep.mubr.msk.f32.mxu0 %vm316_vm0, %v797_v2  ;;  %806 = vmatprep.mubr.msk.f32.mxu1 %vm316_vm0, %v803_v4 }
  0xd3   : > { %898 = vmatpush1.bf16.msra.mxu0 %v1175_v24  ;;  %937 = vmatpush1.bf16.msra.mxu1 %v1175_v24 }
  0xd4   : > { %899 = vmatprep.subr.bf16.mxu0 %v1071_v3  ;;  %938 = vmatprep.subr.bf16.mxu1 %v1071_v3 }
  0xd7   : > { %901 = vmatpush1.bf16.msra.mxu0 %v1177_v25  ;;  %940 = vmatpush1.bf16.msra.mxu1 %v1177_v25  ;;  %v667_v25 = vpop.permute.xlu0 %666 }
  0xd8   : > { %902 = vmatprep.subr.bf16.mxu0 %v1071_v3  ;;  %941 = vmatprep.subr.bf16.mxu1 %v1071_v3 }
  0xdb   : > { %904 = vmatpush1.bf16.msra.mxu0 %v1187_v31  ;;  %943 = vmatpush1.bf16.msra.mxu1 %v1187_v31 }
  0xdc   : > { %905 = vmatprep.subr.bf16.mxu0 %v1071_v3  ;;  %944 = vmatprep.subr.bf16.mxu1 %v1071_v3 }
  0xdf   : > { %907 = vmatpush1.bf16.msra.mxu0 %v1189_v33  ;;  %946 = vmatpush1.bf16.msra.mxu1 %v1189_v33  ;;  %v672_v33 = vpop.permute.xlu1 %671 }
  0xe0   : > { %908 = vmatprep.subr.bf16.mxu0 %v1071_v3  ;;  %947 = vmatprep.subr.bf16.mxu1 %v1071_v3 }
  0xe3   : > { %910 = vmatpush1.bf16.msra.mxu0 %v1195_v36  ;;  %949 = vmatpush1.bf16.msra.mxu1 %v1195_v36 }
  0xe4   : > { %911 = vmatprep.subr.bf16.mxu0 %v1071_v3  ;;  %950 = vmatprep.subr.bf16.mxu1 %v1071_v3 }
  0xe7   : > { %913 = vmatpush1.bf16.msra.mxu0 %v1205_v42  ;;  %952 = vmatpush1.bf16.msra.mxu1 %v1205_v42 }
  0xe8   : > { %914 = vmatprep.subr.bf16.mxu0 %v1071_v3  ;;  %953 = vmatprep.subr.bf16.mxu1 %v1071_v3 }
  0xeb   : > { %916 = vmatpush1.bf16.msra.mxu0 %v1207_v44  ;;  %955 = vmatpush1.bf16.msra.mxu1 %v1207_v44 }
  0xec   : > { %917 = vmatprep.subr.bf16.mxu0 %v1071_v3  ;;  %956 = vmatprep.subr.bf16.mxu1 %v1071_v3 }
  0xef   : > { %919 = vmatpush1.bf16.msra.mxu0 %v1213_v47  ;;  %958 = vmatpush1.bf16.msra.mxu1 %v1213_v47 }
  0xf0   : > { %920 = vmatprep.subr.bf16.mxu0 %v1071_v3  ;;  %959 = vmatprep.subr.bf16.mxu1 %v1071_v3 }
  0xf3   : > { %922 = vmatpush1.bf16.msra.mxu0 %v1223_v53  ;;  %961 = vmatpush1.bf16.msra.mxu1 %v1223_v53 }
  0xf4   : > { %923 = vmatprep.subr.bf16.mxu0 %v1071_v3  ;;  %962 = vmatprep.subr.bf16.mxu1 %v1071_v3 }
  0xf7   : > { %925 = vmatpush1.bf16.msra.mxu0 %v1225_v54  ;;  %964 = vmatpush1.bf16.msra.mxu1 %v1225_v54 }
  0xf8   : > { %926 = vmatprep.subr.bf16.mxu0 %v1071_v3  ;;  %965 = vmatprep.subr.bf16.mxu1 %v1071_v3  ;;  %v799_v3 = vld [vmem:[%s1369_s1 + $0x58] sm:$0xff] }
  0xfb   : > { %928 = vmatpush1.bf16.msra.mxu0 %v1231_v57  ;;  %967 = vmatpush1.bf16.msra.mxu1 %v1231_v57 }
  0xfc   : > { %549 = vmatprep.subr.mxu0 %v1081_v59  ;;  %637 = vmatprep.subr.mxu1 %v1081_v59 }
  0xff   : > { %550 = vmatpush1.msra.mxu0 %v1239_v58  ;;  %638 = vmatpush1.msra.mxu1 %v1239_v58 }
 0x100   : > { %562 = vmatmul.mubr.f32.vlgmr.msra.gmra.mrb[4].mxu0 %v796_v5  ;;  %650 = vmatmul.mubr.f32.vlgmr.msra.gmra.mrb[4].mxu1 %v802_v6 }
 0x101   : > { %801 = vmatprep.mubr.msk.f32.mxu0 %vm316_vm0, %v799_v3  ;;  %807 = vmatprep.mubr.msk.f32.mxu1 %vm316_vm0, %v805_v7 }
 0x104   : > { %567 = vmatmul.mubr.f32.gmra.mrb[6].mxu0 %v798_v8  ;;  %655 = vmatmul.mubr.f32.gmra.mrb[6].mxu1 %v804_v9 }
 0x19c   : > { %v389_v10 = vpop.f32.mrb[0].mxu0 }
 0x19d   : > { %v391_v11 = vpop.f32.mrb[1].mxu0  ;;  %v475_v12 = vpop.f32.mrb[0].mxu1 }
 0x19e   : > { %v484_v13 = vmax.f32 %v389_v10, %v475_v12  ;;  %v477_v14 = vpop.f32.mrb[1].mxu1 }
 0x1a1   : > { %v394_v15 = vpop.f32.mrb[2].mxu0  ;;  %v480_v16 = vpop.f32.mrb[2].mxu1 }
 0x1a2   : > { %v396_v17 = vpop.f32.mrb[3].mxu0  ;;  %v485_v18 = vmax.f32 %v394_v15, %v480_v16  ;;  %v482_v19 = vpop.f32.mrb[3].mxu1 }
 0x1d3   : > { %v563_v20 = vpop.f32.mrb[4].mxu0  ;;  %v651_v21 = vpop.f32.mrb[4].mxu1 }
 0x1d4   : > { %v572_v22 = vmax.f32 %v484_v13, %v563_v20  ;;  %v565_v23 = vpop.f32.mrb[5].mxu0  ;;  %v653_v24 = vpop.f32.mrb[5].mxu1 }
 0x1d6   : > { %v660_v26 = vmax.f32 %v572_v22, %v651_v21 }
 0x1d7   : > { %v568_v27 = vpop.f32.mrb[6].mxu0  ;;  %v656_v28 = vpop.f32.mrb[6].mxu1 }
 0x1d8   : > { %v674_v29 = vadd.f32 %v667_v25, %v660_v26  ;;  %v573_v30 = vmax.f32 %v485_v18, %v568_v27  ;;  %v570_v31 = vpop.f32.mrb[7].mxu0  ;;  %v658_v32 = vpop.f32.mrb[7].mxu1 }
 0x1da   : > { %v676_v34 = vmax.f32 %v674_v29, 0.0  ;;  %v661_v35 = vmax.f32 %v573_v30, %v656_v28  ;;  %686 = sbr.rel (!%p1132_p5) target bundleno = 489 (0x1e9), region = 74 }
 0x1dc   : > { %678 = vst [vmem:[%s206_s11] sm:$0xff] %v676_v34  ;;  %v675_v36 = vadd.f32 %v672_v33, %v661_v35 }
 0x1de   : > { %v677_v37 = vmax.f32 %v675_v36, 0.0 }
 0x1e0   : > { %679 = vst [vmem:[%s206_s11 + $0x8] sm:$0xff] %v677_v37 }
 0x1e3   : > { %v718_v38 = vld [vmem:[%s206_s11] sm:$0xff] }
 0x1e4   : > { %719 = vst [vmem:[%s688_s18] sm:$0xff] %v718_v38 }
 0x1e7   : > { %v720_v39 = vld [vmem:[%s206_s11 + $0x8] sm:$0xff] }
 0x1e8   : > { %721 = vst [vmem:[%s688_s18 + $0x10] sm:$0xff] %v720_v39 }
 0x1e9 PF: > { %p10_p10 = scmp.ge.s32.totalorder %s1119_s16, 4   ;;  %s1373_s12 = smov %s1065_s13 }
 0x1ea   : > { %s1374_s13 = smov %s1130_s19  ;;  %s1375_s14 = smov %s1119_s16 }
 0x1eb   :  { %12 = sbr.rel (!%p10_p10) target bundleno = 2 (0x2), region = 146 }

// kernel: lenet5_forward.5
= control target key start
LH: loop header
LB: loop body
LE: loop exit
PB: predicated region body
PF: predicated region fallthrough
CT: control target
= control target key end

     0   :  { %v696_v4 = vmov 0.0|0.0   ;;  %vm91_vm0 = vcmask 130048   ;;  %s1016_s0 = inlined_call_operand.vmem [shape: f32[4,400], index: 0, kind: input, shape index: {}]   ;;  %s1017_s1 = inlined_call_operand.vmem [shape: f32[400,120], index: 1, kind: input, shape index: {}]   ;;  %s1018_s2 = inlined_call_operand.vmem [shape: f32[1,120], index: 2, kind: input, shape index: {}]   ;;  %s1019_s3 = inlined_call_operand.vmem [shape: f32[120,84], index: 3, kind: input, shape index: {}]   ;;  %s1020_s4 = inlined_call_operand.vmem [shape: f32[1,84], index: 4, kind: input, shape index: {}]   ;;  %s1021_s5 = inlined_call_operand.vmem [shape: f32[84,128], index: 5, kind: input, shape index: {}]   ;;  %s1022_s6 = inlined_call_operand.vmem [shape: f32[1,128], index: 6, kind: input, shape index: {}]   ;;  %s1023_s7 = inlined_call_operand.hbm [shape: f32[4,128], index: 7, kind: output, shape index: {}]  }
   0x1   :  { %v45_v0 = vld [vmem:[%s1017_s1 + $0x80] sm:$0xff]  ;;  %v46_v1 = vld [vmem:[%s1017_s1 + $0x88] sm:$0xff]  ;;  %603 = vmatprep.subr.bf16.mxu1 %v696_v4  ;;  %v47_v10 = vld [vmem:[%s1017_s1 + $0x90] sm:$0xff] }
   0x2   :  { %v29_v2 = vld [vmem:[%s1017_s1] sm:$0xff]  ;;  %v571_v3 = vpack.c.bf16 %v46_v1, %v45_v0  ;;  %v30_v5 = vld [vmem:[%s1017_s1 + $0x8] sm:$0xff]  ;;  %v48_v11 = vld [vmem:[%s1017_s1 + $0x98] sm:$0xff] }
   0x3   :  { %v61_v6 = vld [vmem:[%s1017_s1 + $0x100] sm:$0xff]  ;;  %v62_v7 = vld [vmem:[%s1017_s1 + $0x108] sm:$0xff]  ;;  %v573_v8 = vpack.c.bf16 %v30_v5, %v29_v2  ;;  %v31_v12 = vld [vmem:[%s1017_s1 + $0x10] sm:$0xff]  ;;  %v575_v13 = vpack.c.bf16 %v48_v11, %v47_v10 }
   0x4   :  { %v604_v9 = vpack.c.bf16 %v62_v7, %v61_v6  ;;  %572 = vmatprep.subr.bf16.mxu0 %v571_v3  ;;  %v32_v14 = vld [vmem:[%s1017_s1 + $0x18] sm:$0xff]  ;;  %v63_v15 = vld [vmem:[%s1017_s1 + $0x110] sm:$0xff]  ;;  %v49_v19 = vld [vmem:[%s1017_s1 + $0xa0] sm:$0xff] }
   0x5   :  { %v64_v16 = vld [vmem:[%s1017_s1 + $0x118] sm:$0xff]  ;;  %574 = vmatpush3.bf16.msra.mxu0 %v573_v8  ;;  %v577_v17 = vpack.c.bf16 %v32_v14, %v31_v12  ;;  %v50_v20 = vld [vmem:[%s1017_s1 + $0xa8] sm:$0xff]  ;;  %v33_v21 = vld [vmem:[%s1017_s1 + $0x20] sm:$0xff] }
   0x6   :  { %605 = vmatpush1.bf16.msra.mxu1 %v604_v9  ;;  %v607_v18 = vpack.c.bf16 %v64_v16, %v63_v15  ;;  %576 = vmatprep.subr.bf16.mxu0 %v575_v13  ;;  %v579_v22 = vpack.c.bf16 %v50_v20, %v49_v19  ;;  %v34_v23 = vld [vmem:[%s1017_s1 + $0x28] sm:$0xff]  ;;  %v65_v24 = vld [vmem:[%s1017_s1 + $0x120] sm:$0xff]  ;;  %v51_v26 = vld [vmem:[%s1017_s1 + $0xb0] sm:$0xff] }
   0x7   :  { %606 = vmatprep.subr.bf16.mxu1 %v696_v4  ;;  %v66_v25 = vld [vmem:[%s1017_s1 + $0x128] sm:$0xff]  ;;  %v52_v27 = vld [vmem:[%s1017_s1 + $0xb8] sm:$0xff]  ;;  %v581_v28 = vpack.c.bf16 %v34_v23, %v33_v21  ;;  %v35_v30 = vld [vmem:[%s1017_s1 + $0x30] sm:$0xff] }
   0x8   :  { %v610_v29 = vpack.c.bf16 %v66_v25, %v65_v24  ;;  %v583_v31 = vpack.c.bf16 %v52_v27, %v51_v26  ;;  %v36_v32 = vld [vmem:[%s1017_s1 + $0x38] sm:$0xff]  ;;  %v67_v33 = vld [vmem:[%s1017_s1 + $0x130] sm:$0xff]  ;;  %v53_v35 = vld [vmem:[%s1017_s1 + $0xc0] sm:$0xff] }
   0x9   :  { %578 = vmatpush3.bf16.msra.mxu0 %v577_v17  ;;  %v68_v34 = vld [vmem:[%s1017_s1 + $0x138] sm:$0xff]  ;;  %v54_v36 = vld [vmem:[%s1017_s1 + $0xc8] sm:$0xff]  ;;  %v585_v37 = vpack.c.bf16 %v36_v32, %v35_v30  ;;  %v37_v39 = vld [vmem:[%s1017_s1 + $0x40] sm:$0xff] }
   0xa   :  { %608 = vmatpush1.bf16.msra.mxu1 %v607_v18  ;;  %580 = vmatprep.subr.bf16.mxu0 %v579_v22  ;;  %v613_v38 = vpack.c.bf16 %v68_v34, %v67_v33  ;;  %v587_v40 = vpack.c.bf16 %v54_v36, %v53_v35  ;;  %v38_v41 = vld [vmem:[%s1017_s1 + $0x48] sm:$0xff]  ;;  %v69_v42 = vld [vmem:[%s1017_s1 + $0x140] sm:$0xff]  ;;  %v55_v44 = vld [vmem:[%s1017_s1 + $0xd0] sm:$0xff] }
   0xb   :  { %609 = vmatprep.subr.bf16.mxu1 %v696_v4  ;;  %v70_v43 = vld [vmem:[%s1017_s1 + $0x148] sm:$0xff]  ;;  %v56_v45 = vld [vmem:[%s1017_s1 + $0xd8] sm:$0xff]  ;;  %v589_v46 = vpack.c.bf16 %v38_v41, %v37_v39  ;;  %v39_v48 = vld [vmem:[%s1017_s1 + $0x50] sm:$0xff] }
   0xc   :  { %v616_v47 = vpack.c.bf16 %v70_v43, %v69_v42  ;;  %v40_v49 = vld [vmem:[%s1017_s1 + $0x58] sm:$0xff]  ;;  %v27_v50 = vld [vmem:[%s1016_s0] sm:$0xff]  ;;  %v591_v51 = vpack.c.bf16 %v56_v45, %v55_v44  ;;  %v71_v52 = vld [vmem:[%s1017_s1 + $0x150] sm:$0xff] }
   0xd   :  { %582 = vmatpush3.bf16.msra.mxu0 %v581_v28  ;;  %v72_v53 = vld [vmem:[%s1017_s1 + $0x158] sm:$0xff]  ;;  %v88_v54 = vcombine.high %v27_v50, %v27_v50  ;;  %v28_v55 = vld [vmem:[%s1016_s0 + $0x8] sm:$0xff]  ;;  %v57_v56 = vld [vmem:[%s1017_s1 + $0xe0] sm:$0xff]  ;;  %v593_v59 = vpack.c.bf16 %v40_v49, %v39_v48 }
   0xe   :  { %611 = vmatpush1.bf16.msra.mxu1 %v610_v29  ;;  %584 = vmatprep.subr.bf16.mxu0 %v583_v31  ;;  %v58_v57 = vld [vmem:[%s1017_s1 + $0xe8] sm:$0xff]  ;;  %v89_v58 = vcombine.high %v28_v55, %v28_v55  ;;  %v619_v60 = vpack.c.bf16 %v72_v53, %v71_v52  ;;  %v41_v61 = vld [vmem:[%s1017_s1 + $0x60] sm:$0xff] }
   0xf   :  { %612 = vmatprep.subr.bf16.mxu1 %v696_v4  ;;  %158 = vmatprep.mubr.f32.mxu0 %v88_v54 }
  0x11   :  { %586 = vmatpush3.bf16.msra.mxu0 %v585_v37 }
  0x12   :  { %614 = vmatpush1.bf16.msra.mxu1 %v613_v38  ;;  %588 = vmatprep.subr.bf16.mxu0 %v587_v40 }
  0x13   :  { %615 = vmatprep.subr.bf16.mxu1 %v696_v4 }
  0x15   :  { %590 = vmatpush3.bf16.msra.mxu0 %v589_v46 }
  0x16   :  { %617 = vmatpush1.bf16.msra.mxu1 %v616_v47 }
  0x17   :  { %12 = vsyncpa [#allocation3], 0  ;;  %592 = vmatprep.subr.bf16.mxu0 %v591_v51  ;;  %618 = vmatprep.subr.bf16.mxu1 %v696_v4  ;;  %v595_v62 = vpack.c.bf16 %v58_v57, %v57_v56  ;;  %v42_v63 = vld [vmem:[%s1017_s1 + $0x68] sm:$0xff]  ;;  %v73_v0 = vld [vmem:[%s1017_s1 + $0x160] sm:$0xff]  ;;  %v697_v38 = vmov 0.0   ;;  %vm698_vm1 = vmmov 0  }
  0x18   :  { %v74_v1 = vld [vmem:[%s1017_s1 + $0x168] sm:$0xff]  ;;  %v59_v2 = vld [vmem:[%s1017_s1 + $0xf0] sm:$0xff]  ;;  %v60_v3 = vld [vmem:[%s1017_s1 + $0xf8] sm:$0xff]  ;;  %444 = vmatprep.mubr.msk.f32.mxu1 %vm91_vm0, %v89_v58  ;;  %v597_v5 = vpack.c.bf16 %v42_v63, %v41_v61  ;;  %vm257_vm2 = vcmask 982016   ;;  %vm354_vm3 = vcmask 1043456   ;;  %vm350_vm4 = vcmask 687104  }
  0x19   :  { %594 = vmatpush3.bf16.msra.mxu0 %v593_v59  ;;  %v622_v6 = vpack.c.bf16 %v74_v1, %v73_v0  ;;  %v43_v7 = vld [vmem:[%s1017_s1 + $0x70] sm:$0xff]  ;;  %v599_v8 = vpack.c.bf16 %v60_v3, %v59_v2  ;;  %v44_v9 = vld [vmem:[%s1017_s1 + $0x78] sm:$0xff]  ;;  %v77_v14 = vld [vmem:[%s1017_s1 + $0x180] sm:$0xff] }
  0x1a   :  { %620 = vmatpush1.bf16.msra.mxu1 %v619_v60  ;;  %596 = vmatprep.subr.bf16.mxu0 %v595_v62  ;;  %v75_v10 = vld [vmem:[%s1017_s1 + $0x170] sm:$0xff]  ;;  %v76_v11 = vld [vmem:[%s1017_s1 + $0x178] sm:$0xff]  ;;  %v601_v12 = vpack.c.bf16 %v44_v9, %v43_v7  ;;  %v78_v15 = vld [vmem:[%s1017_s1 + $0x188] sm:$0xff]  ;;  %s699_s1 = smov [#allocation2]  }
  0x1b   :  { %621 = vmatprep.subr.bf16.mxu1 %v696_v4  ;;  %v625_v13 = vpack.c.bf16 %v76_v11, %v75_v10  ;;  %v235_v16 = vld [vmem:[%s1019_s3] sm:$0xff]  ;;  %v236_v17 = vld [vmem:[%s1019_s3 + $0x8] sm:$0xff]  ;;  %v628_v18 = vpack.c.bf16 %v78_v15, %v77_v14  ;;  %v237_v20 = vld [vmem:[%s1019_s3 + $0x10] sm:$0xff]  ;;  %s435_s17 = sshll.u32 %s699_s1, 4  ;;  %s436_s17 = int_to_ptr.vmem [resolvable:$true] %s435_s17 }
  0x1c   :  { %v631_v19 = vpack.c.bf16 %v236_v17, %v235_v16  ;;  %v238_v21 = vld [vmem:[%s1019_s3 + $0x18] sm:$0xff]  ;;  %v239_v23 = vld [vmem:[%s1019_s3 + $0x20] sm:$0xff]  ;;  %v240_v24 = vld [vmem:[%s1019_s3 + $0x28] sm:$0xff]  ;;  %p677_p1 = scmp.lt.s32.totalorder %s436_s17, %s436_s17 }
  0x1d   :  { %598 = vmatpush3.bf16.msra.mxu0 %v597_v5  ;;  %v634_v22 = vpack.c.bf16 %v238_v21, %v237_v20  ;;  %v637_v25 = vpack.c.bf16 %v240_v24, %v239_v23  ;;  %v241_v26 = vld [vmem:[%s1019_s3 + $0x30] sm:$0xff]  ;;  %v242_v27 = vld [vmem:[%s1019_s3 + $0x38] sm:$0xff]  ;;  %v243_v29 = vld [vmem:[%s1019_s3 + $0x40] sm:$0xff] }
  0x1e   :  { %623 = vmatpush1.bf16.msra.mxu1 %v622_v6  ;;  %600 = vmatprep.subr.bf16.mxu0 %v599_v8  ;;  %v640_v28 = vpack.c.bf16 %v242_v27, %v241_v26  ;;  %v244_v30 = vld [vmem:[%s1019_s3 + $0x48] sm:$0xff]  ;;  %v245_v32 = vld [vmem:[%s1019_s3 + $0x50] sm:$0xff]  ;;  %v246_v33 = vld [vmem:[%s1019_s3 + $0x58] sm:$0xff] }
  0x1f   :  { %624 = vmatprep.subr.bf16.mxu1 %v696_v4  ;;  %v643_v31 = vpack.c.bf16 %v244_v30, %v243_v29  ;;  %v646_v34 = vpack.c.bf16 %v246_v33, %v245_v32  ;;  %v247_v35 = vld [vmem:[%s1019_s3 + $0x60] sm:$0xff]  ;;  %v248_v36 = vld [vmem:[%s1019_s3 + $0x68] sm:$0xff]  ;;  %v249_v39 = vld [vmem:[%s1019_s3 + $0x70] sm:$0xff] }
  0x20   :  { %v649_v37 = vpack.c.bf16 %v248_v36, %v247_v35  ;;  %v332_v40 = vld [vmem:[%s1021_s5] sm:$0xff]  ;;  %v333_v41 = vld [vmem:[%s1021_s5 + $0x8] sm:$0xff]  ;;  %v334_v42 = vld [vmem:[%s1021_s5 + $0x10] sm:$0xff] }
  0x21   :  { %602 = vmatpush3.bf16.msra.mxu0 %v601_v12  ;;  %v652_v43 = vpack.c.bf16 %v333_v41, %v332_v40  ;;  %v335_v44 = vld [vmem:[%s1021_s5 + $0x18] sm:$0xff]  ;;  %v336_v46 = vld [vmem:[%s1021_s5 + $0x20] sm:$0xff]  ;;  %v337_v47 = vld [vmem:[%s1021_s5 + $0x28] sm:$0xff] }
  0x22   :  { %626 = vmatpush1.bf16.msra.mxu1 %v625_v13  ;;  %630 = vmatprep.subr.bf16.mxu0 %v696_v4  ;;  %v655_v45 = vpack.c.bf16 %v335_v44, %v334_v42  ;;  %v658_v48 = vpack.c.bf16 %v337_v47, %v336_v46  ;;  %v338_v49 = vld [vmem:[%s1021_s5 + $0x30] sm:$0xff]  ;;  %v443_v54 = vld [vmem:[%s1018_s2] ss:$0 sm:$0xff] }
  0x23   :  { %627 = vmatprep.subr.bf16.mxu1 %v696_v4  ;;  %v340_v61 = vld [vmem:[%s1021_s5 + $0x40] sm:$0xff]  ;;  %v342_v63 = vld [vmem:[%s1021_s5 + $0x50] sm:$0xf] }
  0x24   :  { %159 = vmatmul.mubr.f32.vlgmr.msra.gmra.mrb[0].mxu0 %v27_v50  ;;  %v339_v50 = vld [vmem:[%s1021_s5 + $0x38] sm:$0xff]  ;;  %v445_v0 = vld [vmem:[%s1020_s4] ss:$0 sm:$0xff] }
  0x25   :  { %632 = vmatpush3.bf16.msra.mxu0 %v631_v19  ;;  %543 = vmatprep.mubr.msk.f32.mxu0 %vm698_vm1, %v697_v38  ;;  %v661_v51 = vpack.c.bf16 %v339_v50, %v338_v49  ;;  %v447_v6 = vld [vmem:[%s1022_s6] ss:$0 sm:$0xff] }
  0x26   :  { %629 = vmatpush1.bf16.msra.mxu1 %v628_v18  ;;  %633 = vmatprep.subr.bf16.mxu0 %v696_v4 }
  0x27   :  { %651 = vmatprep.subr.bf16.mxu1 %v696_v4 }
  0x29   :  { %229 = vmatmul.mubr.f32.vlgmr.msra.gmra.mrb[0].mxu1 %v28_v55  ;;  %635 = vmatpush3.bf16.msra.mxu0 %v634_v22 }
  0x2a   :  { %636 = vmatprep.subr.bf16.mxu0 %v696_v4  ;;  %568 = vmatprep.mubr.msk.f32.mxu1 %vm698_vm1, %v697_v38 }
  0x2b   :  { %653 = vmatpush3.bf16.msra.mxu1 %v652_v43 }
  0x2c   :  { %654 = vmatprep.subr.bf16.mxu1 %v696_v4 }
  0x2d   :  { %638 = vmatpush3.bf16.msra.mxu0 %v637_v25 }
  0x2e   :  { %639 = vmatprep.subr.bf16.mxu0 %v696_v4 }
  0x2f   :  { %656 = vmatpush3.bf16.msra.mxu1 %v655_v45 }
  0x30   :  { %657 = vmatprep.subr.bf16.mxu1 %v696_v4 }
  0x31   :  { %641 = vmatpush3.bf16.msra.mxu0 %v640_v28 }
  0x32   :  { %642 = vmatprep.subr.bf16.mxu0 %v696_v4 }
  0x33   :  { %659 = vmatpush3.bf16.msra.mxu1 %v658_v48 }
  0x34   :  { %660 = vmatprep.subr.bf16.mxu1 %v696_v4 }
  0x35   :  { %644 = vmatpush3.bf16.msra.mxu0 %v643_v31 }
  0x36   :  { %645 = vmatprep.subr.bf16.mxu0 %v696_v4 }
  0x37   :  { %662 = vmatpush3.bf16.msra.mxu1 %v661_v51 }
  0x38   :  { %663 = vmatprep.subr.bf16.mxu1 %v696_v4 }
  0x39   :  { %647 = vmatpush3.bf16.msra.mxu0 %v646_v34 }
  0x3a   :  { %648 = vmatprep.subr.bf16.mxu0 %v696_v4  ;;  %v341_v4 = vld [vmem:[%s1021_s5 + $0x48] sm:$0xff]  ;;  %s672_s5 = scalar_lea.vmem %s436_s17, 64 }
  0x3b   :  { %v664_v62 = vpack.c.bf16 %v341_v4, %v340_v61  ;;  %p673_p0 = scmp.ne.s32.totalorder %s436_s17, %s672_s5  ;;  %p678_p2 = scmp.lt.s32.totalorder %s672_s5, %s672_s5 }
  0x3d   :  { %650 = vmatpush3.bf16.msra.mxu0 %v649_v37  ;;  %665 = vmatpush3.bf16.msra.mxu1 %v664_v62  ;;  %p679_p3 = por %p678_p2, %p677_p1 }
  0x3e   :  { %541 = vmatprep.subr.mxu0 %v697_v38  ;;  %566 = vmatprep.subr.mxu1 %v697_v38 }
  0x3f   :  { %p680_p4 = pnand %p679_p3, %p673_p0 }
  0x41   :  { %542 = vmatpush3.msra.mxu0 %v249_v39  ;;  %567 = vmatpush3.msk.msra.mxu1 %vm354_vm3, %v342_v63 }
  0xf7   :  { %v482_v52 = vpop.f32.mrb[0].mxu0 }
  0xf8   :  { %v483_v53 = vpop.f32.mrb[1].mxu0 }
  0xf9   :  { %v484_v55 = vadd.f32 %v483_v53, %v482_v52 }
  0xfb   :  { %v161_v56 = vadd.f32 %v484_v55, %v443_v54 }
  0xfc   :  { %v230_v57 = vpop.f32.mrb[0].mxu1 }
  0xfd   :  { %v232_v58 = vpop.f32.mrb[1].mxu1  ;;  %v231_v59 = vadd.f32 %v230_v57, %v161_v56 }
  0xff   :  { %v234_v60 = vmax.f32 %v231_v59, 0.0 }
 0x101   :  { %544 = vmatmul.mubr.msk.f32.vlgmr.msra.gmra.mrb[2].mxu0 %vm257_vm2, %v234_v60 }
 0x1d4   :  { %v327_v1 = vpop.f32.mrb[2].mxu0 }
 0x1d5   :  { %v328_v2 = vadd.f32 %v445_v0, %v327_v1  ;;  %v545_v3 = vpop.f32.mrb[3].mxu0 }
 0x1d7   :  { %v331_v5 = vmax.f32 %v328_v2, 0.0 }
 0x1d9   :  { %569 = vmatmul.mubr.msk.f32.vlgmr.msra.gmra.mrb[2].mxu1 %vm350_vm4, %v331_v5 }
 0x2ac   :  { %v424_v7 = vpop.f32.mrb[2].mxu1 }
 0x2ad   :  { %v425_v8 = vadd.f32 %v447_v6, %v424_v7  ;;  %v570_v9 = vpop.f32.mrb[3].mxu1 }
 0x2af   :  { %428 = vst [vmem:[#allocation2] sm:$0xf] %v425_v8 }
 0x2b0   :  { %683 = shalt.err (!%p680_p4)
}
 0x2b1   :  { %s684_s19 = scalar_lea.hbm %s1023_s7, 64 }
 0x2b2   :  { %p685_p5 = scmp.ne.s32.totalorder %s1023_s7, %s684_s19  ;;  %p688_p6 = scmp.lt.u32.totalorder %s684_s19, %s1023_s7 }
 0x2b4   :  { %p690_p7 = pnand %p688_p6, %p685_p5 }
 0x2b6   :  { %693 = shalt.err (!%p690_p7)
}
 0x2b7   :  { %438 = dma.vmem_to_hbm [thread:$0]  %s436_s17, 64, %s1023_s7, [#allocation3]  }
 0x2b8   :  { %694 = dma.done.wait [#allocation3], 64  }
 0x2b9   :  { %695 = vsyncadd [#allocation3], 4294967232 }
 0x2ba   :  { %442 = vsyncpa [#allocation3], 1 }

</bundles_post_ra>
